<compile_context>
chip_gen: v6e
topology: v6e:2x2x1
jax: 0.10.0
libtpu: 0.0.40
codegen_flags: <defaults>
</compile_context>

<pallas_src>
import functools

import jax
import jax.numpy as jnp
from jax.experimental import pallas as pl
from jax.experimental.pallas import tpu as pltpu


# ----------------------------- helpers --------------------------------------

def _tile(dim, target, align):
    """Largest multiple of `align` that divides `dim` and is <= target."""
    if dim <= target:
        return dim
    t = (target // align) * align
    while t >= align:
        if dim % t == 0:
            return t
        t -= align
    if dim <= 4096:          # small dims: full block is always legal & cheap
        return dim
    raise ValueError(
        f"no {align}-aligned tile divides {dim}; pad this dimension")


def _erf(x):
    """Abramowitz & Stegun 7.1.26 erf (|err| < 1.5e-7), exp/VPU ops only."""
    a1, a2, a3, a4, a5 = (0.254829592, -0.284496736, 1.421413741,
                          -1.453152027, 1.061405429)
    p = 0.3275911
    ax = jnp.abs(x)
    t = 1.0 / (1.0 + p * ax)
    poly = ((((a5 * t + a4) * t + a3) * t + a2) * t + a1) * t
    y = 1.0 - poly * jnp.exp(-ax * ax)
    return jnp.where(x >= 0, y, -y)


def _gelu(x):
    return x * 0.5 * (1.0 + _erf(x * 0.7071067811865476))


# ----------------------------- linear (tiled) --------------------------------

def _linear_kernel(x_ref, w_ref, b_ref, o_ref, acc_ref, *, act):
    @pl.when(pl.program_id(2) == 0)
    def _():
        acc_ref[...] = jnp.zeros_like(acc_ref)

    acc_ref[...] += jnp.dot(x_ref[...], w_ref[...],
                            preferred_element_type=jnp.float32)

    @pl.when(pl.program_id(2) == pl.num_programs(2) - 1)
    def _():
        y = acc_ref[...] + b_ref[...]
        if act == "gelu":
            y = _gelu(y)
        o_ref[...] = y.astype(o_ref.dtype)


def linear(x, w, b, act=None, tm=256, tn=512, tk=1024):
    """x:(M,K) bf16 @ w:(K,N) bf16 + b:(N,) f32 -> (M,N) bf16."""
    M, K = x.shape
    N = w.shape[1]
    tm = _tile(M, tm, 8)
    tn = _tile(N, tn, 128)
    tk = _tile(K, tk, 128)
    return pl.pallas_call(
        functools.partial(_linear_kernel, act=act),
        out_shape=jax.ShapeDtypeStruct((M, N), jnp.bfloat16),
        grid=(M // tm, N // tn, K // tk),
        in_specs=[pl.BlockSpec((tm, tk), lambda i, j, k: (i, k)),
                  pl.BlockSpec((tk, tn), lambda i, j, k: (k, j)),
                  pl.BlockSpec((1, tn), lambda i, j, k: (0, j))],
        out_specs=pl.BlockSpec((tm, tn), lambda i, j, k: (i, j)),
        scratch_shapes=[pltpu.VMEM((tm, tn), jnp.float32)],
        compiler_params=pltpu.CompilerParams(
            dimension_semantics=("parallel", "parallel", "arbitrary")),
    )(x, w, b.reshape(1, N))


# --------------- linear + residual-add + LayerNorm fused epilogue ------------

def _linear_addln_kernel(x_ref, w_ref, b_ref, r_ref, g_ref, bln_ref,
                         o_ref, acc_ref):
    @pl.when(pl.program_id(1) == 0)
    def _():
        acc_ref[...] = jnp.zeros_like(acc_ref)

    acc_ref[...] += jnp.dot(x_ref[...], w_ref[...],
                            preferred_element_type=jnp.float32)

    @pl.when(pl.program_id(1) == pl.num_programs(1) - 1)
    def _():
        y = acc_ref[...] + b_ref[...] + r_ref[...].astype(jnp.float32)
        mu = jnp.mean(y, axis=-1, keepdims=True)
        d = y - mu
        var = jnp.mean(d * d, axis=-1, keepdims=True)
        o_ref[...] = (d * jax.lax.rsqrt(var + 1e-12)
                      * g_ref[...] + bln_ref[...]).astype(o_ref.dtype)


def linear_add_ln(x, w, b, residual, gamma, beta, tm=256, tk=1024):
    """LayerNorm(x @ w + b + residual); N is kept whole so rows are complete."""
    M, K = x.shape
    N = w.shape[1]
    tm = _tile(M, tm, 8)
    tk = _tile(K, tk, 128)
    return pl.pallas_call(
        _linear_addln_kernel,
        out_shape=jax.ShapeDtypeStruct((M, N), jnp.bfloat16),
        grid=(M // tm, K // tk),
        in_specs=[pl.BlockSpec((tm, tk), lambda i, k: (i, k)),
                  pl.BlockSpec((tk, N), lambda i, k: (k, 0)),
                  pl.BlockSpec((1, N), lambda i, k: (0, 0)),
                  pl.BlockSpec((tm, N), lambda i, k: (i, 0)),
                  pl.BlockSpec((1, N), lambda i, k: (0, 0)),
                  pl.BlockSpec((1, N), lambda i, k: (0, 0))],
        out_specs=pl.BlockSpec((tm, N), lambda i, k: (i, 0)),
        scratch_shapes=[pltpu.VMEM((tm, N), jnp.float32)],
        compiler_params=pltpu.CompilerParams(
            dimension_semantics=("parallel", "arbitrary")),
    )(x, w, b.reshape(1, N), residual, gamma.reshape(1, N), beta.reshape(1, N))


# ------------------------------- LayerNorm -----------------------------------

def _ln_kernel(x_ref, g_ref, b_ref, o_ref):
    x = x_ref[...].astype(jnp.float32)
    mu = jnp.mean(x, axis=-1, keepdims=True)
    d = x - mu
    var = jnp.mean(d * d, axis=-1, keepdims=True)
    o_ref[...] = (d * jax.lax.rsqrt(var + 1e-12)
                  * g_ref[...] + b_ref[...]).astype(o_ref.dtype)


def layernorm(x, gamma, beta, tm=512):
    M, H = x.shape
    tm = _tile(M, tm, 8)
    return pl.pallas_call(
        _ln_kernel,
        out_shape=jax.ShapeDtypeStruct((M, H), jnp.bfloat16),
        grid=(M // tm,),
        in_specs=[pl.BlockSpec((tm, H), lambda i: (i, 0)),
                  pl.BlockSpec((1, H), lambda i: (0, 0)),
                  pl.BlockSpec((1, H), lambda i: (0, 0))],
        out_specs=pl.BlockSpec((tm, H), lambda i: (i, 0)),
        compiler_params=pltpu.CompilerParams(dimension_semantics=("parallel",)),
    )(x, gamma.reshape(1, H), beta.reshape(1, H))


# ------------------------------- attention -----------------------------------

def _attn_kernel(q_ref, k_ref, v_ref, m_ref, o_ref, *, scale):
    # TODO(synk): add kv-block flash tiling for very long sequences; full
    #             softmax per head-pair is fine at the lengths used here.
    q = q_ref[0]                                   # (hpb, S, d) bf16
    k = k_ref[0]
    v = v_ref[0]
    s = jnp.einsum('hqd,hkd->hqk', q, k,
                   preferred_element_type=jnp.float32)
    s = s * scale + m_ref[...]                     # (1,1,S) additive mask
    s_max = jnp.max(s, axis=-1, keepdims=True)
    p = jnp.exp(s - s_max)
    denom = jnp.sum(p, axis=-1, keepdims=True)
    o = jnp.einsum('hqk,hkd->hqd', p.astype(v.dtype), v,
                   preferred_element_type=jnp.float32)
    o_ref[0] = (o / denom).astype(o_ref.dtype)


def attention(q, k, v, ext_mask):
    """q,k,v: (B, n_heads, S, d_head) bf16; ext_mask: (B, 1, S) f32."""
    B, Hn, S, Dh = q.shape
    hpb = 2 if Hn % 2 == 0 else 1                  # 2 heads/program for MXU fill
    scale = 1.0 / (Dh ** 0.5)
    qkv_spec = pl.BlockSpec((1, hpb, S, Dh), lambda b, h: (b, h, 0, 0))
    return pl.pallas_call(
        functools.partial(_attn_kernel, scale=scale),
        out_shape=jax.ShapeDtypeStruct((B, Hn, S, Dh), jnp.bfloat16),
        grid=(B, Hn // hpb),
        in_specs=[qkv_spec, qkv_spec, qkv_spec,
                  pl.BlockSpec((1, 1, S), lambda b, h: (b, 0, 0))],
        out_specs=pl.BlockSpec((1, hpb, S, Dh), lambda b, h: (b, h, 0, 0)),
        compiler_params=pltpu.CompilerParams(
            dimension_semantics=("parallel", "parallel")),
    )(q, k, v, ext_mask)


# ---------- fused MLM decoder + masked cross-entropy + cls logits ------------

def _dec_ce_kernel(h_ref, cls_ref, w_ref, b_ref, lab_ref,
                   nll_ref, valid_ref, cls_out_ref,
                   m_sc, s_sc, p_sc, *, tv):
    j = pl.program_id(0)

    @pl.when(j == 0)
    def _():
        m_sc[...] = jnp.full_like(m_sc, -jnp.inf)
        s_sc[...] = jnp.zeros_like(s_sc)
        p_sc[...] = jnp.zeros_like(p_sc)

    w = w_ref[...]                                   # (H, tv) bf16
    bias = b_ref[...]                                # (1, tv) f32
    # logits for this vocab tile only — never materialized in HBM.
    logits = jnp.dot(h_ref[...], w, preferred_element_type=jnp.float32) + bias
    labels = lab_ref[...]                            # (M, 1) int32
    col = jax.lax.broadcasted_iota(jnp.int32, logits.shape, 1) + j * tv
    onehot = (col == labels).astype(jnp.float32)
    p_sc[...] += jnp.sum(logits * onehot, axis=-1, keepdims=True)

    m_new = jnp.maximum(m_sc[...], jnp.max(logits, axis=-1, keepdims=True))
    s_sc[...] = (s_sc[...] * jnp.exp(m_sc[...] - m_new)
                 + jnp.sum(jnp.exp(logits - m_new), axis=-1, keepdims=True))
    m_sc[...] = m_new

    # cls (position-0) logits against the already-resident weight tile.
    cls_out_ref[...] = (jnp.dot(cls_ref[...], w,
                                preferred_element_type=jnp.float32) + bias)

    @pl.when(j == pl.num_programs(0) - 1)
    def _():
        valid = (labels != -100).astype(jnp.float32)
        lse = m_sc[...] + jnp.log(s_sc[...])
        nll_ref[...] = (lse - p_sc[...]) * valid
        valid_ref[...] = valid


def decoder_ce_cls(h, cls_h, dec_w, dec_b, labels_flat, tv=1024):
    """Single pass over dec_w: all rows resident, vocab tiles streamed once."""
    M, H = h.shape
    B = cls_h.shape[0]
    V = dec_w.shape[1]
    tv = min(tv, ((V + 127) // 128) * 128)
    Vp = ((V + tv - 1) // tv) * tv
    if Vp != V:                                     # pad vocab to a tile multiple
        dec_w = jnp.pad(dec_w, ((0, 0), (0, Vp - V)))
        dec_b = jnp.pad(dec_b, (0, Vp - V), constant_values=-1e9)

    nll, valid, cls_logits = pl.pallas_call(
        functools.partial(_dec_ce_kernel, tv=tv),
        out_shape=[jax.ShapeDtypeStruct((M, 1), jnp.float32),
                   jax.ShapeDtypeStruct((M, 1), jnp.float32),
                   jax.ShapeDtypeStruct((B, Vp), jnp.float32)],
        grid=(Vp // tv,),
        in_specs=[pl.BlockSpec((M, H), lambda j: (0, 0)),     # rows: resident
                  pl.BlockSpec((B, H), lambda j: (0, 0)),     # cls rows: resident
                  pl.BlockSpec((H, tv), lambda j: (0, j)),    # weight: streamed 1x
                  pl.BlockSpec((1, tv), lambda j: (0, j)),
                  pl.BlockSpec((M, 1), lambda j: (0, 0))],
        out_specs=[pl.BlockSpec((M, 1), lambda j: (0, 0)),
                   pl.BlockSpec((M, 1), lambda j: (0, 0)),
                   pl.BlockSpec((B, tv), lambda j: (0, j))],
        scratch_shapes=[pltpu.VMEM((M, 1), jnp.float32),
                        pltpu.VMEM((M, 1), jnp.float32),
                        pltpu.VMEM((M, 1), jnp.float32)],
        compiler_params=pltpu.CompilerParams(
            dimension_semantics=("arbitrary",),
            vmem_limit_bytes=32 * 1024 * 1024),
    )(h, cls_h, dec_w, dec_b.reshape(1, Vp), labels_flat.reshape(M, 1))
    return nll, valid, cls_logits[:, :V]


# ----------------------------- model (glue) ----------------------------------

def init_params(key, cfg):
    H, V, I, L = cfg["hidden"], cfg["vocab"], cfg["inter"], cfg["layers"]
    keys = iter(jax.random.split(key, 8 + 8 * L))

    def w(shape):   # weights stored bf16 in HBM (matmul operands)
        return (jax.random.normal(next(keys), shape, jnp.float32)
                * 0.02).astype(jnp.bfloat16)

    p = {
        "word_emb": w((V, H)),
        "pos_emb": w((cfg["max_pos"], H)),
        "type_emb": w((2, H)),
        "emb_ln_g": jnp.ones((H,), jnp.float32),
        "emb_ln_b": jnp.zeros((H,), jnp.float32),
        "head_w": w((H, H)), "head_b": jnp.zeros((H,), jnp.float32),
        "head_ln_g": jnp.ones((H,), jnp.float32),
        "head_ln_b": jnp.zeros((H,), jnp.float32),
        "dec_w": w((H, V)), "dec_b": jnp.zeros((V,), jnp.float32),
        "layers": [],
    }
    for _ in range(L):
        p["layers"].append({
            "wqkv": w((H, 3 * H)), "bqkv": jnp.zeros((3 * H,), jnp.float32),
            "wo": w((H, H)), "bo": jnp.zeros((H,), jnp.float32),
            "ln1_g": jnp.ones((H,), jnp.float32), "ln1_b": jnp.zeros((H,), jnp.float32),
            "wi": w((H, I)), "bi": jnp.zeros((I,), jnp.float32),
            "wf": w((I, H)), "bf": jnp.zeros((H,), jnp.float32),
            "ln2_g": jnp.ones((H,), jnp.float32), "ln2_b": jnp.zeros((H,), jnp.float32),
        })
    return p


def model_forward(params, input_ids, attention_mask, labels, cfg):
    B, S = input_ids.shape
    H, Hn, V = cfg["hidden"], cfg["heads"], cfg["vocab"]
    Dh = H // Hn

    # embeddings (gather = glue, summed in f32) + LayerNorm kernel
    emb = (params["word_emb"][input_ids].astype(jnp.float32)
           + params["pos_emb"][:S][None].astype(jnp.float32)
           + params["type_emb"][0][None, None].astype(jnp.float32))
    x = layernorm(emb.reshape(B * S, H).astype(jnp.bfloat16),
                  params["emb_ln_g"], params["emb_ln_b"])

    # HF-style extended additive attention mask, (B, 1, S)
    ext_mask = (1.0 - attention_mask.astype(jnp.float32))[:, None, :] * -10000.0

    for lp in params["layers"]:
        qkv = linear(x, lp["wqkv"], lp["bqkv"])                # (B*S, 3H) bf16
        qkv = qkv.reshape(B, S, 3, Hn, Dh)
        q = jnp.transpose(qkv[:, :, 0], (0, 2, 1, 3))          # (B, Hn, S, Dh)
        k = jnp.transpose(qkv[:, :, 1], (0, 2, 1, 3))
        v = jnp.transpose(qkv[:, :, 2], (0, 2, 1, 3))
        ctx = attention(q, k, v, ext_mask)                     # (B, Hn, S, Dh)
        ctx = jnp.transpose(ctx, (0, 2, 1, 3)).reshape(B * S, H)
        # output projection with fused residual-add + LayerNorm
        x = linear_add_ln(ctx, lp["wo"], lp["bo"], x, lp["ln1_g"], lp["ln1_b"])
        inter = linear(x, lp["wi"], lp["bi"], act="gelu")
        x = linear_add_ln(inter, lp["wf"], lp["bf"], x, lp["ln2_g"], lp["ln2_b"])

    # MLM head: transform + gelu + LN
    h = linear(x, params["head_w"], params["head_b"], act="gelu")
    h = layernorm(h, params["head_ln_g"], params["head_ln_b"])   # (B*S, H) bf16

    cls_h = h.reshape(B, S, H)[:, 0, :]                          # (B, H) bf16

    # fused decoder + masked-LM cross-entropy (+ cls logits, ignore_index=-100)
    nll, valid, cls_logits = decoder_ce_cls(
        h, cls_h, params["dec_w"], params["dec_b"],
        labels.reshape(-1).astype(jnp.int32))
    loss = jnp.sum(nll) / jnp.maximum(jnp.sum(valid), 1.0)

    # Model.forward returns (loss, logits[:, 0, :])
    return loss, cls_logits


# --------------------------------- main ---------------------------------------

if __name__ == "__main__":
    cfg = dict(vocab=128, hidden=32, heads=4, inter=64, layers=2, max_pos=16)
    B, S = 2, 8

    key = jax.random.PRNGKey(0)
    k_ids, k_msk, k_lab, k_par = jax.random.split(key, 4)

    input_ids = jax.random.randint(k_ids, (B, S), 0, cfg["vocab"], dtype=jnp.int32)
    attention_mask = jnp.ones((B, S), dtype=jnp.int32)
    masked_pos = jax.random.bernoulli(k_msk, 0.4, (B, S))
    rand_labels = jax.random.randint(k_lab, (B, S), 0, cfg["vocab"], dtype=jnp.int32)
    labels = jnp.where(masked_pos, rand_labels, -100).astype(jnp.int32)

    params = init_params(k_par, cfg)

    fwd = jax.jit(functools.partial(model_forward, cfg=cfg))
    loss, cls_logits = fwd(params, input_ids, attention_mask, labels)
    jax.block_until_ready((loss, cls_logits))

    assert loss.shape == ()
    assert cls_logits.shape == (B, cfg["vocab"])
    assert bool(jnp.isfinite(loss)) and bool(jnp.all(jnp.isfinite(cls_logits)))
    print("KERNEL_OK")
</pallas_src>

<mosaic_0001>
module attributes {stable_mosaic.version = 11 : i64} {
  func.func @_ln_kernel(%arg0: i32, %arg1: memref<16x32xbf16, #tpu.memory_space<vmem>>, %arg2: memref<1x32xf32, #tpu.memory_space<vmem>>, %arg3: memref<1x32xf32, #tpu.memory_space<vmem>>, %arg4: memref<16x32xbf16, #tpu.memory_space<vmem>>) attributes {dimension_semantics = [#tpu.dimension_semantics<parallel>], iteration_bounds = array<i64: 1>, scalar_prefetch = 0 : i64, scratch_operands = 0 : i64, tpu.core_type = #tpu.core_type<tc>, window_params = [{transform_indices = @transform_0, window_bounds = array<i64: 16, 32>}, {pipeline_mode = #tpu.pipeline_mode<synchronous>, transform_indices = @transform_1, window_bounds = array<i64: 1, 32>}, {pipeline_mode = #tpu.pipeline_mode<synchronous>, transform_indices = @transform_2, window_bounds = array<i64: 1, 32>}, {transform_indices = @transform_3, window_bounds = array<i64: 16, 32>}]} {
    %c0 = arith.constant 0 : index
    %c0_0 = arith.constant 0 : index
    %0 = vector.load %arg1[%c0, %c0_0] : memref<16x32xbf16, #tpu.memory_space<vmem>>, vector<16x32xbf16>
    %1 = arith.extf %0 : vector<16x32xbf16> to vector<16x32xf32>
    %cst = arith.constant dense<0.000000e+00> : vector<16xf32>
    %2 = vector.multi_reduction <add>, %1, %cst [1] : vector<16x32xf32> to vector<16xf32>
    %3 = vector.shape_cast %2 : vector<16xf32> to vector<16x1xf32>
    %cst_1 = arith.constant 3.200000e+01 : f32
    %4 = vector.broadcast %cst_1 : f32 to vector<16x1xf32>
    %5 = arith.divf %3, %4 : vector<16x1xf32>
    %6 = vector.broadcast %5 : vector<16x1xf32> to vector<16x32xf32>
    %7 = arith.subf %1, %6 : vector<16x32xf32>
    %8 = arith.mulf %7, %7 : vector<16x32xf32>
    %cst_2 = arith.constant dense<0.000000e+00> : vector<16xf32>
    %9 = vector.multi_reduction <add>, %8, %cst_2 [1] : vector<16x32xf32> to vector<16xf32>
    %10 = vector.shape_cast %9 : vector<16xf32> to vector<16x1xf32>
    %cst_3 = arith.constant 3.200000e+01 : f32
    %11 = vector.broadcast %cst_3 : f32 to vector<16x1xf32>
    %12 = arith.divf %10, %11 : vector<16x1xf32>
    %cst_4 = arith.constant 9.99999996E-13 : f32
    %13 = vector.broadcast %cst_4 : f32 to vector<16x1xf32>
    %14 = arith.addf %12, %13 : vector<16x1xf32>
    %15 = math.rsqrt %14 : vector<16x1xf32>
    %16 = vector.broadcast %15 : vector<16x1xf32> to vector<16x32xf32>
    %17 = arith.mulf %7, %16 : vector<16x32xf32>
    %c0_5 = arith.constant 0 : index
    %c0_6 = arith.constant 0 : index
    %18 = vector.load %arg2[%c0_5, %c0_6] : memref<1x32xf32, #tpu.memory_space<vmem>>, vector<1x32xf32>
    %19 = vector.broadcast %18 : vector<1x32xf32> to vector<16x32xf32>
    %20 = arith.mulf %17, %19 : vector<16x32xf32>
    %c0_7 = arith.constant 0 : index
    %c0_8 = arith.constant 0 : index
    %21 = vector.load %arg3[%c0_7, %c0_8] : memref<1x32xf32, #tpu.memory_space<vmem>>, vector<1x32xf32>
    %22 = vector.broadcast %21 : vector<1x32xf32> to vector<16x32xf32>
    %23 = arith.addf %20, %22 : vector<16x32xf32>
    %24 = arith.truncf %23 : vector<16x32xf32> to vector<16x32xbf16>
    %c0_9 = arith.constant 0 : index
    %c0_10 = arith.constant 0 : index
    %25 = vector.load %arg4[%c0_9, %c0_10] : memref<16x32xbf16, #tpu.memory_space<vmem>>, vector<16x32xbf16>
    tpu.vector_store %arg4[%c0_9, %c0_10], %24 {strides = array<i32>} : memref<16x32xbf16, #tpu.memory_space<vmem>>, vector<16x32xbf16>,
    return
  }
  func.func @transform_0(%arg0: i32) -> (i32, i32) {
    %c0_i32 = arith.constant 0 : i32
    %c0_i32_0 = arith.constant 0 : i32
    return %arg0, %c0_i32 : i32, i32
  }
  func.func @transform_1(%arg0: i32) -> (i32, i32) {
    %c0_i32 = arith.constant 0 : i32
    %c0_i32_0 = arith.constant 0 : i32
    %c0_i32_1 = arith.constant 0 : i32
    return %c0_i32, %c0_i32_0 : i32, i32
  }
  func.func @transform_2(%arg0: i32) -> (i32, i32) {
    %c0_i32 = arith.constant 0 : i32
    %c0_i32_0 = arith.constant 0 : i32
    %c0_i32_1 = arith.constant 0 : i32
    return %c0_i32, %c0_i32_0 : i32, i32
  }
  func.func @transform_3(%arg0: i32) -> (i32, i32) {
    %c0_i32 = arith.constant 0 : i32
    %c0_i32_0 = arith.constant 0 : i32
    return %arg0, %c0_i32 : i32, i32
  }
}

module attributes {stable_mosaic.version = 11 : i64} {
  func.func @_linear_kernel(%arg0: i32, %arg1: i32, %arg2: i32, %arg3: memref<16x32xbf16, #tpu.memory_space<vmem>>, %arg4: memref<32x96xbf16, #tpu.memory_space<vmem>>, %arg5: memref<1x96xf32, #tpu.memory_space<vmem>>, %arg6: memref<16x96xbf16, #tpu.memory_space<vmem>>, %arg7: memref<16x96xf32, #tpu.memory_space<vmem>>) attributes {dimension_semantics = [#tpu.dimension_semantics<parallel>, #tpu.dimension_semantics<parallel>, #tpu.dimension_semantics<arbitrary>], iteration_bounds = array<i64: 1, 1, 1>, scalar_prefetch = 0 : i64, scratch_operands = 1 : i64, tpu.core_type = #tpu.core_type<tc>, window_params = [{transform_indices = @transform_0, window_bounds = array<i64: 16, 32>}, {transform_indices = @transform_1, window_bounds = array<i64: 32, 96>}, {transform_indices = @transform_2, window_bounds = array<i64: 1, 96>}, {transform_indices = @transform_3, window_bounds = array<i64: 16, 96>}]} {
    %c0_i32 = arith.constant 0 : i32
    %0 = arith.cmpi eq, %arg2, %c0_i32 : i32
    %1 = arith.extui %0 : i1 to i32
    %c0_i32_0 = arith.constant 0 : i32
    %2 = arith.cmpi ne, %1, %c0_i32_0 : i32
    scf.if %2 {
      %cst_10 = arith.constant 0.000000e+00 : f32
      %12 = vector.broadcast %cst_10 : f32 to vector<16x96xf32>
      %c0_11 = arith.constant 0 : index
      %c0_12 = arith.constant 0 : index
      %13 = vector.load %arg7[%c0_11, %c0_12] : memref<16x96xf32, #tpu.memory_space<vmem>>, vector<16x96xf32>
      tpu.vector_store %arg7[%c0_11, %c0_12], %12 {strides = array<i32>} : memref<16x96xf32, #tpu.memory_space<vmem>>, vector<16x96xf32>,
    } else {
    }
    %c0 = arith.constant 0 : index
    %c0_1 = arith.constant 0 : index
    %3 = vector.load %arg7[%c0, %c0_1] : memref<16x96xf32, #tpu.memory_space<vmem>>, vector<16x96xf32>
    %c0_2 = arith.constant 0 : index
    %c0_3 = arith.constant 0 : index
    %4 = vector.load %arg3[%c0_2, %c0_3] : memref<16x32xbf16, #tpu.memory_space<vmem>>, vector<16x32xbf16>
    %c0_4 = arith.constant 0 : index
    %c0_5 = arith.constant 0 : index
    %5 = vector.load %arg4[%c0_4, %c0_5] : memref<32x96xbf16, #tpu.memory_space<vmem>>, vector<32x96xbf16>
    %cst = arith.constant dense<0.000000e+00> : vector<16x96xf32>
    %6 = tpu.matmul %4, %5, %cst {dimension_numbers = #tpu.dot_dimension_numbers<[1], [0], [0], [1], [0, 0, 1, 1], [], []>} : vector<16x32xbf16>, vector<32x96xbf16>, vector<16x96xf32> -> vector<16x96xf32>
    %7 = arith.addf %3, %6 : vector<16x96xf32>
    %c0_6 = arith.constant 0 : index
    %c0_7 = arith.constant 0 : index
    %8 = vector.load %arg7[%c0_6, %c0_7] : memref<16x96xf32, #tpu.memory_space<vmem>>, vector<16x96xf32>
    tpu.vector_store %arg7[%c0_6, %c0_7], %7 {strides = array<i32>} : memref<16x96xf32, #tpu.memory_space<vmem>>, vector<16x96xf32>,
    %c0_i32_8 = arith.constant 0 : i32
    %9 = arith.cmpi eq, %arg2, %c0_i32_8 : i32
    %10 = arith.extui %9 : i1 to i32
    %c0_i32_9 = arith.constant 0 : i32
    %11 = arith.cmpi ne, %10, %c0_i32_9 : i32
    scf.if %11 {
      %c0_10 = arith.constant 0 : index
      %c0_11 = arith.constant 0 : index
      %12 = vector.load %arg7[%c0_10, %c0_11] : memref<16x96xf32, #tpu.memory_space<vmem>>, vector<16x96xf32>
      %c0_12 = arith.constant 0 : index
      %c0_13 = arith.constant 0 : index
      %13 = vector.load %arg5[%c0_12, %c0_13] : memref<1x96xf32, #tpu.memory_space<vmem>>, vector<1x96xf32>
      %14 = vector.broadcast %13 : vector<1x96xf32> to vector<16x96xf32>
      %15 = arith.addf %12, %14 : vector<16x96xf32>
      %16 = arith.truncf %15 : vector<16x96xf32> to vector<16x96xbf16>
      %c0_14 = arith.constant 0 : index
      %c0_15 = arith.constant 0 : index
      %17 = vector.load %arg6[%c0_14, %c0_15] : memref<16x96xbf16, #tpu.memory_space<vmem>>, vector<16x96xbf16>
      tpu.vector_store %arg6[%c0_14, %c0_15], %16 {strides = array<i32>} : memref<16x96xbf16, #tpu.memory_space<vmem>>, vector<16x96xbf16>,
    } else {
    }
    return
  }
  func.func @transform_0(%arg0: i32, %arg1: i32, %arg2: i32) -> (i32, i32) {
    %c0_i32 = arith.constant 0 : i32
    return %arg0, %arg2 : i32, i32
  }
  func.func @transform_1(%arg0: i32, %arg1: i32, %arg2: i32) -> (i32, i32) {
    %c0_i32 = arith.constant 0 : i32
    return %arg2, %arg1 : i32, i32
  }
  func.func @transform_2(%arg0: i32, %arg1: i32, %arg2: i32) -> (i32, i32) {
    %c0_i32 = arith.constant 0 : i32
    %c0_i32_0 = arith.constant 0 : i32
    return %c0_i32, %arg1 : i32, i32
  }
  func.func @transform_3(%arg0: i32, %arg1: i32, %arg2: i32) -> (i32, i32) {
    %c0_i32 = arith.constant 0 : i32
    return %arg0, %arg1 : i32, i32
  }
}

module attributes {stable_mosaic.version = 11 : i64} {
  func.func @_attn_kernel(%arg0: i32, %arg1: i32, %arg2: memref<1x2x8x8xbf16, #tpu.memory_space<vmem>>, %arg3: memref<1x2x8x8xbf16, #tpu.memory_space<vmem>>, %arg4: memref<1x2x8x8xbf16, #tpu.memory_space<vmem>>, %arg5: memref<1x1x8xf32, #tpu.memory_space<vmem>>, %arg6: memref<1x2x8x8xbf16, #tpu.memory_space<vmem>>) attributes {dimension_semantics = [#tpu.dimension_semantics<parallel>, #tpu.dimension_semantics<parallel>], iteration_bounds = array<i64: 2, 2>, scalar_prefetch = 0 : i64, scratch_operands = 0 : i64, tpu.core_type = #tpu.core_type<tc>, window_params = [{transform_indices = @transform_0, window_bounds = array<i64: 1, 2, 8, 8>}, {transform_indices = @transform_1, window_bounds = array<i64: 1, 2, 8, 8>}, {transform_indices = @transform_2, window_bounds = array<i64: 1, 2, 8, 8>}, {transform_indices = @transform_3, window_bounds = array<i64: 1, 1, 8>}, {transform_indices = @transform_4, window_bounds = array<i64: 1, 2, 8, 8>}]} {
    %c0 = arith.constant 0 : index
    %c0_0 = arith.constant 0 : index
    %c0_1 = arith.constant 0 : index
    %c0_2 = arith.constant 0 : index
    %0 = vector.load %arg2[%c0, %c0_0, %c0_1, %c0_2] : memref<1x2x8x8xbf16, #tpu.memory_space<vmem>>, vector<1x2x8x8xbf16>
    %1 = vector.shape_cast %0 : vector<1x2x8x8xbf16> to vector<2x8x8xbf16>
    %c0_3 = arith.constant 0 : index
    %c0_4 = arith.constant 0 : index
    %c0_5 = arith.constant 0 : index
    %c0_6 = arith.constant 0 : index
    %2 = vector.load %arg3[%c0_3, %c0_4, %c0_5, %c0_6] : memref<1x2x8x8xbf16, #tpu.memory_space<vmem>>, vector<1x2x8x8xbf16>
    %3 = vector.shape_cast %2 : vector<1x2x8x8xbf16> to vector<2x8x8xbf16>
    %c0_7 = arith.constant 0 : index
    %c0_8 = arith.constant 0 : index
    %c0_9 = arith.constant 0 : index
    %c0_10 = arith.constant 0 : index
    %4 = vector.load %arg4[%c0_7, %c0_8, %c0_9, %c0_10] : memref<1x2x8x8xbf16, #tpu.memory_space<vmem>>, vector<1x2x8x8xbf16>
    %5 = vector.shape_cast %4 : vector<1x2x8x8xbf16> to vector<2x8x8xbf16>
    "tpu.trace_start"() <{level = 10 : i32, message = "hqd,hkd->hqk"}> : () -> ()
    %cst = arith.constant dense<0.000000e+00> : vector<2x8x8xf32>
    %6 = tpu.matmul %1, %3, %cst {dimension_numbers = #tpu.dot_dimension_numbers<[2], [2], [1], [1], [0, 0, 0, 1, 1, 1], [0], [0]>} : vector<2x8x8xbf16>, vector<2x8x8xbf16>, vector<2x8x8xf32> -> vector<2x8x8xf32>
    "tpu.trace_stop"() : () -> ()
    %cst_11 = arith.constant 0.353553385 : f32
    %7 = vector.broadcast %cst_11 : f32 to vector<2x8x8xf32>
    %8 = arith.mulf %6, %7 : vector<2x8x8xf32>
    %c0_12 = arith.constant 0 : index
    %c0_13 = arith.constant 0 : index
    %c0_14 = arith.constant 0 : index
    %9 = vector.load %arg5[%c0_12, %c0_13, %c0_14] : memref<1x1x8xf32, #tpu.memory_space<vmem>>, vector<1x1x8xf32>
    %10 = vector.broadcast %9 : vector<1x1x8xf32> to vector<2x8x8xf32>
    %11 = arith.addf %8, %10 : vector<2x8x8xf32>
    %cst_15 = arith.constant dense<0xFF800000> : vector<2x8xf32>
    %12 = vector.multi_reduction <maximumf>, %11, %cst_15 [2] : vector<2x8x8xf32> to vector<2x8xf32>
    %13 = vector.shape_cast %12 : vector<2x8xf32> to vector<2x8x1xf32>
    %14 = vector.broadcast %13 : vector<2x8x1xf32> to vector<2x8x8xf32>
    %15 = arith.subf %11, %14 : vector<2x8x8xf32>
    %16 = math.exp %15 : vector<2x8x8xf32>
    %cst_16 = arith.constant dense<0.000000e+00> : vector<2x8xf32>
    %17 = vector.multi_reduction <add>, %16, %cst_16 [2] : vector<2x8x8xf32> to vector<2x8xf32>
    %18 = vector.shape_cast %17 : vector<2x8xf32> to vector<2x8x1xf32>
    %19 = arith.truncf %16 : vector<2x8x8xf32> to vector<2x8x8xbf16>
    "tpu.trace_start"() <{level = 10 : i32, message = "hqk,hkd->hqd"}> : () -> ()
    %cst_17 = arith.constant dense<0.000000e+00> : vector<2x8x8xf32>
    %20 = tpu.matmul %19, %5, %cst_17 {dimension_numbers = #tpu.dot_dimension_numbers<[2], [1], [1], [2], [0, 0, 0, 1, 1, 2], [0], [0]>} : vector<2x8x8xbf16>, vector<2x8x8xbf16>, vector<2x8x8xf32> -> vector<2x8x8xf32>
    "tpu.trace_stop"() : () -> ()
    %21 = vector.broadcast %18 : vector<2x8x1xf32> to vector<2x8x8xf32>
    %22 = arith.divf %20, %21 : vector<2x8x8xf32>
    %23 = arith.truncf %22 : vector<2x8x8xf32> to vector<2x8x8xbf16>
    %c0_18 = arith.constant 0 : index
    %c0_19 = arith.constant 0 : index
    %c0_20 = arith.constant 0 : index
    %c0_21 = arith.constant 0 : index
    %24 = vector.load %arg6[%c0_18, %c0_19, %c0_20, %c0_21] : memref<1x2x8x8xbf16, #tpu.memory_space<vmem>>, vector<1x2x8x8xbf16>
    %25 = vector.shape_cast %24 : vector<1x2x8x8xbf16> to vector<2x8x8xbf16>
    %26 = vector.shape_cast %23 : vector<2x8x8xbf16> to vector<1x2x8x8xbf16>
    tpu.vector_store %arg6[%c0_18, %c0_19, %c0_20, %c0_21], %26 {strides = array<i32>} : memref<1x2x8x8xbf16, #tpu.memory_space<vmem>>, vector<1x2x8x8xbf16>,
    return
  }
  func.func @transform_0(%arg0: i32, %arg1: i32) -> (i32, i32, i32, i32) {
    %c0_i32 = arith.constant 0 : i32
    %c0_i32_0 = arith.constant 0 : i32
    %c0_i32_1 = arith.constant 0 : i32
    return %arg0, %arg1, %c0_i32, %c0_i32_0 : i32, i32, i32, i32
  }
  func.func @transform_1(%arg0: i32, %arg1: i32) -> (i32, i32, i32, i32) {
    %c0_i32 = arith.constant 0 : i32
    %c0_i32_0 = arith.constant 0 : i32
    %c0_i32_1 = arith.constant 0 : i32
    return %arg0, %arg1, %c0_i32, %c0_i32_0 : i32, i32, i32, i32
  }
  func.func @transform_2(%arg0: i32, %arg1: i32) -> (i32, i32, i32, i32) {
    %c0_i32 = arith.constant 0 : i32
    %c0_i32_0 = arith.constant 0 : i32
    %c0_i32_1 = arith.constant 0 : i32
    return %arg0, %arg1, %c0_i32, %c0_i32_0 : i32, i32, i32, i32
  }
  func.func @transform_3(%arg0: i32, %arg1: i32) -> (i32, i32, i32) {
    %c0_i32 = arith.constant 0 : i32
    %c0_i32_0 = arith.constant 0 : i32
    %c0_i32_1 = arith.constant 0 : i32
    return %arg0, %c0_i32, %c0_i32_0 : i32, i32, i32
  }
  func.func @transform_4(%arg0: i32, %arg1: i32) -> (i32, i32, i32, i32) {
    %c0_i32 = arith.constant 0 : i32
    %c0_i32_0 = arith.constant 0 : i32
    %c0_i32_1 = arith.constant 0 : i32
    return %arg0, %arg1, %c0_i32, %c0_i32_0 : i32, i32, i32, i32
  }
}

module attributes {stable_mosaic.version = 11 : i64} {
  func.func @_linear_kernel(%arg0: i32, %arg1: i32, %arg2: i32, %arg3: memref<16x32xbf16, #tpu.memory_space<vmem>>, %arg4: memref<32x64xbf16, #tpu.memory_space<vmem>>, %arg5: memref<1x64xf32, #tpu.memory_space<vmem>>, %arg6: memref<16x64xbf16, #tpu.memory_space<vmem>>, %arg7: memref<16x64xf32, #tpu.memory_space<vmem>>) attributes {dimension_semantics = [#tpu.dimension_semantics<parallel>, #tpu.dimension_semantics<parallel>, #tpu.dimension_semantics<arbitrary>], iteration_bounds = array<i64: 1, 1, 1>, scalar_prefetch = 0 : i64, scratch_operands = 1 : i64, tpu.core_type = #tpu.core_type<tc>, window_params = [{transform_indices = @transform_0, window_bounds = array<i64: 16, 32>}, {transform_indices = @transform_1, window_bounds = array<i64: 32, 64>}, {transform_indices = @transform_2, window_bounds = array<i64: 1, 64>}, {transform_indices = @transform_3, window_bounds = array<i64: 16, 64>}]} {
    %c0_i32 = arith.constant 0 : i32
    %0 = arith.cmpi eq, %arg2, %c0_i32 : i32
    %1 = arith.extui %0 : i1 to i32
    %c0_i32_0 = arith.constant 0 : i32
    %2 = arith.cmpi ne, %1, %c0_i32_0 : i32
    scf.if %2 {
      %cst_10 = arith.constant 0.000000e+00 : f32
      %12 = vector.broadcast %cst_10 : f32 to vector<16x64xf32>
      %c0_11 = arith.constant 0 : index
      %c0_12 = arith.constant 0 : index
      %13 = vector.load %arg7[%c0_11, %c0_12] : memref<16x64xf32, #tpu.memory_space<vmem>>, vector<16x64xf32>
      tpu.vector_store %arg7[%c0_11, %c0_12], %12 {strides = array<i32>} : memref<16x64xf32, #tpu.memory_space<vmem>>, vector<16x64xf32>,
    } else {
    }
    %c0 = arith.constant 0 : index
    %c0_1 = arith.constant 0 : index
    %3 = vector.load %arg7[%c0, %c0_1] : memref<16x64xf32, #tpu.memory_space<vmem>>, vector<16x64xf32>
    %c0_2 = arith.constant 0 : index
    %c0_3 = arith.constant 0 : index
    %4 = vector.load %arg3[%c0_2, %c0_3] : memref<16x32xbf16, #tpu.memory_space<vmem>>, vector<16x32xbf16>
    %c0_4 = arith.constant 0 : index
    %c0_5 = arith.constant 0 : index
    %5 = vector.load %arg4[%c0_4, %c0_5] : memref<32x64xbf16, #tpu.memory_space<vmem>>, vector<32x64xbf16>
    %cst = arith.constant dense<0.000000e+00> : vector<16x64xf32>
    %6 = tpu.matmul %4, %5, %cst {dimension_numbers = #tpu.dot_dimension_numbers<[1], [0], [0], [1], [0, 0, 1, 1], [], []>} : vector<16x32xbf16>, vector<32x64xbf16>, vector<16x64xf32> -> vector<16x64xf32>
    %7 = arith.addf %3, %6 : vector<16x64xf32>
    %c0_6 = arith.constant 0 : index
    %c0_7 = arith.constant 0 : index
    %8 = vector.load %arg7[%c0_6, %c0_7] : memref<16x64xf32, #tpu.memory_space<vmem>>, vector<16x64xf32>
    tpu.vector_store %arg7[%c0_6, %c0_7], %7 {strides = array<i32>} : memref<16x64xf32, #tpu.memory_space<vmem>>, vector<16x64xf32>,
    %c0_i32_8 = arith.constant 0 : i32
    %9 = arith.cmpi eq, %arg2, %c0_i32_8 : i32
    %10 = arith.extui %9 : i1 to i32
    %c0_i32_9 = arith.constant 0 : i32
    %11 = arith.cmpi ne, %10, %c0_i32_9 : i32
    scf.if %11 {
      %c0_10 = arith.constant 0 : index
      %c0_11 = arith.constant 0 : index
      %12 = vector.load %arg7[%c0_10, %c0_11] : memref<16x64xf32, #tpu.memory_space<vmem>>, vector<16x64xf32>
      %c0_12 = arith.constant 0 : index
      %c0_13 = arith.constant 0 : index
      %13 = vector.load %arg5[%c0_12, %c0_13] : memref<1x64xf32, #tpu.memory_space<vmem>>, vector<1x64xf32>
      %14 = vector.broadcast %13 : vector<1x64xf32> to vector<16x64xf32>
      %15 = arith.addf %12, %14 : vector<16x64xf32>
      %cst_14 = arith.constant 5.000000e-01 : f32
      %16 = vector.broadcast %cst_14 : f32 to vector<16x64xf32>
      %17 = arith.mulf %15, %16 : vector<16x64xf32>
      %cst_15 = arith.constant 0.707106769 : f32
      %18 = vector.broadcast %cst_15 : f32 to vector<16x64xf32>
      %19 = arith.mulf %15, %18 : vector<16x64xf32>
      %20 = math.absf %19 : vector<16x64xf32>
      %cst_16 = arith.constant 0.327591091 : f32
      %21 = vector.broadcast %cst_16 : f32 to vector<16x64xf32>
      %22 = arith.mulf %21, %20 : vector<16x64xf32>
      %cst_17 = arith.constant 1.000000e+00 : f32
      %23 = vector.broadcast %cst_17 : f32 to vector<16x64xf32>
      %24 = arith.addf %23, %22 : vector<16x64xf32>
      %cst_18 = arith.constant 1.000000e+00 : f32
      %25 = vector.broadcast %cst_18 : f32 to vector<16x64xf32>
      %26 = arith.divf %25, %24 : vector<16x64xf32>
      %cst_19 = arith.constant 1.06140542 : f32
      %27 = vector.broadcast %cst_19 : f32 to vector<16x64xf32>
      %28 = arith.mulf %27, %26 : vector<16x64xf32>
      %cst_20 = arith.constant -1.45315206 : f32
      %29 = vector.broadcast %cst_20 : f32 to vector<16x64xf32>
      %30 = arith.addf %28, %29 : vector<16x64xf32>
      %31 = arith.mulf %30, %26 : vector<16x64xf32>
      %cst_21 = arith.constant 1.42141378 : f32
      %32 = vector.broadcast %cst_21 : f32 to vector<16x64xf32>
      %33 = arith.addf %31, %32 : vector<16x64xf32>
      %34 = arith.mulf %33, %26 : vector<16x64xf32>
      %cst_22 = arith.constant -0.284496725 : f32
      %35 = vector.broadcast %cst_22 : f32 to vector<16x64xf32>
      %36 = arith.addf %34, %35 : vector<16x64xf32>
      %37 = arith.mulf %36, %26 : vector<16x64xf32>
      %cst_23 = arith.constant 0.254829586 : f32
      %38 = vector.broadcast %cst_23 : f32 to vector<16x64xf32>
      %39 = arith.addf %37, %38 : vector<16x64xf32>
      %40 = arith.mulf %39, %26 : vector<16x64xf32>
      %cst_24 = arith.constant 0.000000e+00 : f32
      %41 = vector.broadcast %cst_24 : f32 to vector<16x64xf32>
      %42 = arith.subf %41, %20 : vector<16x64xf32>
      %43 = arith.mulf %42, %20 : vector<16x64xf32>
      %44 = math.exp %43 : vector<16x64xf32>
      %45 = arith.mulf %40, %44 : vector<16x64xf32>
      %cst_25 = arith.constant 1.000000e+00 : f32
      %46 = vector.broadcast %cst_25 : f32 to vector<16x64xf32>
      %47 = arith.subf %46, %45 : vector<16x64xf32>
      %cst_26 = arith.constant 0.000000e+00 : f32
      %48 = vector.broadcast %cst_26 : f32 to vector<16x64xf32>
      %49 = arith.cmpf oge, %19, %48 : vector<16x64xf32>
      %cst_27 = arith.constant 0.000000e+00 : f32
      %50 = vector.broadcast %cst_27 : f32 to vector<16x64xf32>
      %51 = arith.subf %50, %47 : vector<16x64xf32>
      %52 = arith.select %49, %47, %51 : vector<16x64xi1>, vector<16x64xf32>
      %cst_28 = arith.constant 1.000000e+00 : f32
      %53 = vector.broadcast %cst_28 : f32 to vector<16x64xf32>
      %54 = arith.addf %53, %52 : vector<16x64xf32>
      %55 = arith.mulf %17, %54 : vector<16x64xf32>
      %56 = arith.truncf %55 : vector<16x64xf32> to vector<16x64xbf16>
      %c0_29 = arith.constant 0 : index
      %c0_30 = arith.constant 0 : index
      %57 = vector.load %arg6[%c0_29, %c0_30] : memref<16x64xbf16, #tpu.memory_space<vmem>>, vector<16x64xbf16>
      tpu.vector_store %arg6[%c0_29, %c0_30], %56 {strides = array<i32>} : memref<16x64xbf16, #tpu.memory_space<vmem>>, vector<16x64xbf16>,
    } else {
    }
    return
  }
  func.func @transform_0(%arg0: i32, %arg1: i32, %arg2: i32) -> (i32, i32) {
    %c0_i32 = arith.constant 0 : i32
    return %arg0, %arg2 : i32, i32
  }
  func.func @transform_1(%arg0: i32, %arg1: i32, %arg2: i32) -> (i32, i32) {
    %c0_i32 = arith.constant 0 : i32
    return %arg2, %arg1 : i32, i32
  }
  func.func @transform_2(%arg0: i32, %arg1: i32, %arg2: i32) -> (i32, i32) {
    %c0_i32 = arith.constant 0 : i32
    %c0_i32_0 = arith.constant 0 : i32
    return %c0_i32, %arg1 : i32, i32
  }
  func.func @transform_3(%arg0: i32, %arg1: i32, %arg2: i32) -> (i32, i32) {
    %c0_i32 = arith.constant 0 : i32
    return %arg0, %arg1 : i32, i32
  }
}

module attributes {stable_mosaic.version = 11 : i64} {
  func.func @_linear_addln_kernel(%arg0: i32, %arg1: i32, %arg2: memref<16x64xbf16, #tpu.memory_space<vmem>>, %arg3: memref<64x32xbf16, #tpu.memory_space<vmem>>, %arg4: memref<1x32xf32, #tpu.memory_space<vmem>>, %arg5: memref<16x32xbf16, #tpu.memory_space<vmem>>, %arg6: memref<1x32xf32, #tpu.memory_space<vmem>>, %arg7: memref<1x32xf32, #tpu.memory_space<vmem>>, %arg8: memref<16x32xbf16, #tpu.memory_space<vmem>>, %arg9: memref<16x32xf32, #tpu.memory_space<vmem>>) attributes {dimension_semantics = [#tpu.dimension_semantics<parallel>, #tpu.dimension_semantics<arbitrary>], iteration_bounds = array<i64: 1, 1>, scalar_prefetch = 0 : i64, scratch_operands = 1 : i64, tpu.core_type = #tpu.core_type<tc>, window_params = [{transform_indices = @transform_0, window_bounds = array<i64: 16, 64>}, {transform_indices = @transform_1, window_bounds = array<i64: 64, 32>}, {pipeline_mode = #tpu.pipeline_mode<synchronous>, transform_indices = @transform_2, window_bounds = array<i64: 1, 32>}, {transform_indices = @transform_3, window_bounds = array<i64: 16, 32>}, {pipeline_mode = #tpu.pipeline_mode<synchronous>, transform_indices = @transform_4, window_bounds = array<i64: 1, 32>}, {pipeline_mode = #tpu.pipeline_mode<synchronous>, transform_indices = @transform_5, window_bounds = array<i64: 1, 32>}, {transform_indices = @transform_6, window_bounds = array<i64: 16, 32>}]} {
    %c0_i32 = arith.constant 0 : i32
    %0 = arith.cmpi eq, %arg1, %c0_i32 : i32
    %1 = arith.extui %0 : i1 to i32
    %c0_i32_0 = arith.constant 0 : i32
    %2 = arith.cmpi ne, %1, %c0_i32_0 : i32
    scf.if %2 {
      %cst_10 = arith.constant 0.000000e+00 : f32
      %12 = vector.broadcast %cst_10 : f32 to vector<16x32xf32>
      %c0_11 = arith.constant 0 : index
      %c0_12 = arith.constant 0 : index
      %13 = vector.load %arg9[%c0_11, %c0_12] : memref<16x32xf32, #tpu.memory_space<vmem>>, vector<16x32xf32>
      tpu.vector_store %arg9[%c0_11, %c0_12], %12 {strides = array<i32>} : memref<16x32xf32, #tpu.memory_space<vmem>>, vector<16x32xf32>,
    } else {
    }
    %c0 = arith.constant 0 : index
    %c0_1 = arith.constant 0 : index
    %3 = vector.load %arg9[%c0, %c0_1] : memref<16x32xf32, #tpu.memory_space<vmem>>, vector<16x32xf32>
    %c0_2 = arith.constant 0 : index
    %c0_3 = arith.constant 0 : index
    %4 = vector.load %arg2[%c0_2, %c0_3] : memref<16x64xbf16, #tpu.memory_space<vmem>>, vector<16x64xbf16>
    %c0_4 = arith.constant 0 : index
    %c0_5 = arith.constant 0 : index
    %5 = vector.load %arg3[%c0_4, %c0_5] : memref<64x32xbf16, #tpu.memory_space<vmem>>, vector<64x32xbf16>
    %cst = arith.constant dense<0.000000e+00> : vector<16x32xf32>
    %6 = tpu.matmul %4, %5, %cst {dimension_numbers = #tpu.dot_dimension_numbers<[1], [0], [0], [1], [0, 0, 1, 1], [], []>} : vector<16x64xbf16>, vector<64x32xbf16>, vector<16x32xf32> -> vector<16x32xf32>
    %7 = arith.addf %3, %6 : vector<16x32xf32>
    %c0_6 = arith.constant 0 : index
    %c0_7 = arith.constant 0 : index
    %8 = vector.load %arg9[%c0_6, %c0_7] : memref<16x32xf32, #tpu.memory_space<vmem>>, vector<16x32xf32>
    tpu.vector_store %arg9[%c0_6, %c0_7], %7 {strides = array<i32>} : memref<16x32xf32, #tpu.memory_space<vmem>>, vector<16x32xf32>,
    %c0_i32_8 = arith.constant 0 : i32
    %9 = arith.cmpi eq, %arg1, %c0_i32_8 : i32
    %10 = arith.extui %9 : i1 to i32
    %c0_i32_9 = arith.constant 0 : i32
    %11 = arith.cmpi ne, %10, %c0_i32_9 : i32
    scf.if %11 {
      %c0_10 = arith.constant 0 : index
      %c0_11 = arith.constant 0 : index
      %12 = vector.load %arg9[%c0_10, %c0_11] : memref<16x32xf32, #tpu.memory_space<vmem>>, vector<16x32xf32>
      %c0_12 = arith.constant 0 : index
      %c0_13 = arith.constant 0 : index
      %13 = vector.load %arg4[%c0_12, %c0_13] : memref<1x32xf32, #tpu.memory_space<vmem>>, vector<1x32xf32>
      %14 = vector.broadcast %13 : vector<1x32xf32> to vector<16x32xf32>
      %15 = arith.addf %12, %14 : vector<16x32xf32>
      %c0_14 = arith.constant 0 : index
      %c0_15 = arith.constant 0 : index
      %16 = vector.load %arg5[%c0_14, %c0_15] : memref<16x32xbf16, #tpu.memory_space<vmem>>, vector<16x32xbf16>
      %17 = arith.extf %16 : vector<16x32xbf16> to vector<16x32xf32>
      %18 = arith.addf %15, %17 : vector<16x32xf32>
      %cst_16 = arith.constant dense<0.000000e+00> : vector<16xf32>
      %19 = vector.multi_reduction <add>, %18, %cst_16 [1] : vector<16x32xf32> to vector<16xf32>
      %20 = vector.shape_cast %19 : vector<16xf32> to vector<16x1xf32>
      %cst_17 = arith.constant 3.200000e+01 : f32
      %21 = vector.broadcast %cst_17 : f32 to vector<16x1xf32>
      %22 = arith.divf %20, %21 : vector<16x1xf32>
      %23 = vector.broadcast %22 : vector<16x1xf32> to vector<16x32xf32>
      %24 = arith.subf %18, %23 : vector<16x32xf32>
      %25 = arith.mulf %24, %24 : vector<16x32xf32>
      %cst_18 = arith.constant dense<0.000000e+00> : vector<16xf32>
      %26 = vector.multi_reduction <add>, %25, %cst_18 [1] : vector<16x32xf32> to vector<16xf32>
      %27 = vector.shape_cast %26 : vector<16xf32> to vector<16x1xf32>
      %cst_19 = arith.constant 3.200000e+01 : f32
      %28 = vector.broadcast %cst_19 : f32 to vector<16x1xf32>
      %29 = arith.divf %27, %28 : vector<16x1xf32>
      %cst_20 = arith.constant 9.99999996E-13 : f32
      %30 = vector.broadcast %cst_20 : f32 to vector<16x1xf32>
      %31 = arith.addf %29, %30 : vector<16x1xf32>
      %32 = math.rsqrt %31 : vector<16x1xf32>
      %33 = vector.broadcast %32 : vector<16x1xf32> to vector<16x32xf32>
      %34 = arith.mulf %24, %33 : vector<16x32xf32>
      %c0_21 = arith.constant 0 : index
      %c0_22 = arith.constant 0 : index
      %35 = vector.load %arg6[%c0_21, %c0_22] : memref<1x32xf32, #tpu.memory_space<vmem>>, vector<1x32xf32>
      %36 = vector.broadcast %35 : vector<1x32xf32> to vector<16x32xf32>
      %37 = arith.mulf %34, %36 : vector<16x32xf32>
      %c0_23 = arith.constant 0 : index
      %c0_24 = arith.constant 0 : index
      %38 = vector.load %arg7[%c0_23, %c0_24] : memref<1x32xf32, #tpu.memory_space<vmem>>, vector<1x32xf32>
      %39 = vector.broadcast %38 : vector<1x32xf32> to vector<16x32xf32>
      %40 = arith.addf %37, %39 : vector<16x32xf32>
      %41 = arith.truncf %40 : vector<16x32xf32> to vector<16x32xbf16>
      %c0_25 = arith.constant 0 : index
      %c0_26 = arith.constant 0 : index
      %42 = vector.load %arg8[%c0_25, %c0_26] : memref<16x32xbf16, #tpu.memory_space<vmem>>, vector<16x32xbf16>
      tpu.vector_store %arg8[%c0_25, %c0_26], %41 {strides = array<i32>} : memref<16x32xbf16, #tpu.memory_space<vmem>>, vector<16x32xbf16>,
    } else {
    }
    return
  }
  func.func @transform_0(%arg0: i32, %arg1: i32) -> (i32, i32) {
    %c0_i32 = arith.constant 0 : i32
    return %arg0, %arg1 : i32, i32
  }
  func.func @transform_1(%arg0: i32, %arg1: i32) -> (i32, i32) {
    %c0_i32 = arith.constant 0 : i32
    %c0_i32_0 = arith.constant 0 : i32
    return %arg1, %c0_i32 : i32, i32
  }
  func.func @transform_2(%arg0: i32, %arg1: i32) -> (i32, i32) {
    %c0_i32 = arith.constant 0 : i32
    %c0_i32_0 = arith.constant 0 : i32
    %c0_i32_1 = arith.constant 0 : i32
    return %c0_i32, %c0_i32_0 : i32, i32
  }
  func.func @transform_3(%arg0: i32, %arg1: i32) -> (i32, i32) {
    %c0_i32 = arith.constant 0 : i32
    %c0_i32_0 = arith.constant 0 : i32
    return %arg0, %c0_i32 : i32, i32
  }
  func.func @transform_4(%arg0: i32, %arg1: i32) -> (i32, i32) {
    %c0_i32 = arith.constant 0 : i32
    %c0_i32_0 = arith.constant 0 : i32
    %c0_i32_1 = arith.constant 0 : i32
    return %c0_i32, %c0_i32_0 : i32, i32
  }
  func.func @transform_5(%arg0: i32, %arg1: i32) -> (i32, i32) {
    %c0_i32 = arith.constant 0 : i32
    %c0_i32_0 = arith.constant 0 : i32
    %c0_i32_1 = arith.constant 0 : i32
    return %c0_i32, %c0_i32_0 : i32, i32
  }
  func.func @transform_6(%arg0: i32, %arg1: i32) -> (i32, i32) {
    %c0_i32 = arith.constant 0 : i32
    %c0_i32_0 = arith.constant 0 : i32
    return %arg0, %c0_i32 : i32, i32
  }
}

module attributes {stable_mosaic.version = 11 : i64} {
  func.func @_linear_addln_kernel(%arg0: i32, %arg1: i32, %arg2: memref<16x32xbf16, #tpu.memory_space<vmem>>, %arg3: memref<32x32xbf16, #tpu.memory_space<vmem>>, %arg4: memref<1x32xf32, #tpu.memory_space<vmem>>, %arg5: memref<16x32xbf16, #tpu.memory_space<vmem>>, %arg6: memref<1x32xf32, #tpu.memory_space<vmem>>, %arg7: memref<1x32xf32, #tpu.memory_space<vmem>>, %arg8: memref<16x32xbf16, #tpu.memory_space<vmem>>, %arg9: memref<16x32xf32, #tpu.memory_space<vmem>>) attributes {dimension_semantics = [#tpu.dimension_semantics<parallel>, #tpu.dimension_semantics<arbitrary>], iteration_bounds = array<i64: 1, 1>, scalar_prefetch = 0 : i64, scratch_operands = 1 : i64, tpu.core_type = #tpu.core_type<tc>, window_params = [{transform_indices = @transform_0, window_bounds = array<i64: 16, 32>}, {transform_indices = @transform_1, window_bounds = array<i64: 32, 32>}, {pipeline_mode = #tpu.pipeline_mode<synchronous>, transform_indices = @transform_2, window_bounds = array<i64: 1, 32>}, {transform_indices = @transform_3, window_bounds = array<i64: 16, 32>}, {pipeline_mode = #tpu.pipeline_mode<synchronous>, transform_indices = @transform_4, window_bounds = array<i64: 1, 32>}, {pipeline_mode = #tpu.pipeline_mode<synchronous>, transform_indices = @transform_5, window_bounds = array<i64: 1, 32>}, {transform_indices = @transform_6, window_bounds = array<i64: 16, 32>}]} {
    %c0_i32 = arith.constant 0 : i32
    %0 = arith.cmpi eq, %arg1, %c0_i32 : i32
    %1 = arith.extui %0 : i1 to i32
    %c0_i32_0 = arith.constant 0 : i32
    %2 = arith.cmpi ne, %1, %c0_i32_0 : i32
    scf.if %2 {
      %cst_10 = arith.constant 0.000000e+00 : f32
      %12 = vector.broadcast %cst_10 : f32 to vector<16x32xf32>
      %c0_11 = arith.constant 0 : index
      %c0_12 = arith.constant 0 : index
      %13 = vector.load %arg9[%c0_11, %c0_12] : memref<16x32xf32, #tpu.memory_space<vmem>>, vector<16x32xf32>
      tpu.vector_store %arg9[%c0_11, %c0_12], %12 {strides = array<i32>} : memref<16x32xf32, #tpu.memory_space<vmem>>, vector<16x32xf32>,
    } else {
    }
    %c0 = arith.constant 0 : index
    %c0_1 = arith.constant 0 : index
    %3 = vector.load %arg9[%c0, %c0_1] : memref<16x32xf32, #tpu.memory_space<vmem>>, vector<16x32xf32>
    %c0_2 = arith.constant 0 : index
    %c0_3 = arith.constant 0 : index
    %4 = vector.load %arg2[%c0_2, %c0_3] : memref<16x32xbf16, #tpu.memory_space<vmem>>, vector<16x32xbf16>
    %c0_4 = arith.constant 0 : index
    %c0_5 = arith.constant 0 : index
    %5 = vector.load %arg3[%c0_4, %c0_5] : memref<32x32xbf16, #tpu.memory_space<vmem>>, vector<32x32xbf16>
    %cst = arith.constant dense<0.000000e+00> : vector<16x32xf32>
    %6 = tpu.matmul %4, %5, %cst {dimension_numbers = #tpu.dot_dimension_numbers<[1], [0], [0], [1], [0, 0, 1, 1], [], []>} : vector<16x32xbf16>, vector<32x32xbf16>, vector<16x32xf32> -> vector<16x32xf32>
    %7 = arith.addf %3, %6 : vector<16x32xf32>
    %c0_6 = arith.constant 0 : index
    %c0_7 = arith.constant 0 : index
    %8 = vector.load %arg9[%c0_6, %c0_7] : memref<16x32xf32, #tpu.memory_space<vmem>>, vector<16x32xf32>
    tpu.vector_store %arg9[%c0_6, %c0_7], %7 {strides = array<i32>} : memref<16x32xf32, #tpu.memory_space<vmem>>, vector<16x32xf32>,
    %c0_i32_8 = arith.constant 0 : i32
    %9 = arith.cmpi eq, %arg1, %c0_i32_8 : i32
    %10 = arith.extui %9 : i1 to i32
    %c0_i32_9 = arith.constant 0 : i32
    %11 = arith.cmpi ne, %10, %c0_i32_9 : i32
    scf.if %11 {
      %c0_10 = arith.constant 0 : index
      %c0_11 = arith.constant 0 : index
      %12 = vector.load %arg9[%c0_10, %c0_11] : memref<16x32xf32, #tpu.memory_space<vmem>>, vector<16x32xf32>
      %c0_12 = arith.constant 0 : index
      %c0_13 = arith.constant 0 : index
      %13 = vector.load %arg4[%c0_12, %c0_13] : memref<1x32xf32, #tpu.memory_space<vmem>>, vector<1x32xf32>
      %14 = vector.broadcast %13 : vector<1x32xf32> to vector<16x32xf32>
      %15 = arith.addf %12, %14 : vector<16x32xf32>
      %c0_14 = arith.constant 0 : index
      %c0_15 = arith.constant 0 : index
      %16 = vector.load %arg5[%c0_14, %c0_15] : memref<16x32xbf16, #tpu.memory_space<vmem>>, vector<16x32xbf16>
      %17 = arith.extf %16 : vector<16x32xbf16> to vector<16x32xf32>
      %18 = arith.addf %15, %17 : vector<16x32xf32>
      %cst_16 = arith.constant dense<0.000000e+00> : vector<16xf32>
      %19 = vector.multi_reduction <add>, %18, %cst_16 [1] : vector<16x32xf32> to vector<16xf32>
      %20 = vector.shape_cast %19 : vector<16xf32> to vector<16x1xf32>
      %cst_17 = arith.constant 3.200000e+01 : f32
      %21 = vector.broadcast %cst_17 : f32 to vector<16x1xf32>
      %22 = arith.divf %20, %21 : vector<16x1xf32>
      %23 = vector.broadcast %22 : vector<16x1xf32> to vector<16x32xf32>
      %24 = arith.subf %18, %23 : vector<16x32xf32>
      %25 = arith.mulf %24, %24 : vector<16x32xf32>
      %cst_18 = arith.constant dense<0.000000e+00> : vector<16xf32>
      %26 = vector.multi_reduction <add>, %25, %cst_18 [1] : vector<16x32xf32> to vector<16xf32>
      %27 = vector.shape_cast %26 : vector<16xf32> to vector<16x1xf32>
      %cst_19 = arith.constant 3.200000e+01 : f32
      %28 = vector.broadcast %cst_19 : f32 to vector<16x1xf32>
      %29 = arith.divf %27, %28 : vector<16x1xf32>
      %cst_20 = arith.constant 9.99999996E-13 : f32
      %30 = vector.broadcast %cst_20 : f32 to vector<16x1xf32>
      %31 = arith.addf %29, %30 : vector<16x1xf32>
      %32 = math.rsqrt %31 : vector<16x1xf32>
      %33 = vector.broadcast %32 : vector<16x1xf32> to vector<16x32xf32>
      %34 = arith.mulf %24, %33 : vector<16x32xf32>
      %c0_21 = arith.constant 0 : index
      %c0_22 = arith.constant 0 : index
      %35 = vector.load %arg6[%c0_21, %c0_22] : memref<1x32xf32, #tpu.memory_space<vmem>>, vector<1x32xf32>
      %36 = vector.broadcast %35 : vector<1x32xf32> to vector<16x32xf32>
      %37 = arith.mulf %34, %36 : vector<16x32xf32>
      %c0_23 = arith.constant 0 : index
      %c0_24 = arith.constant 0 : index
      %38 = vector.load %arg7[%c0_23, %c0_24] : memref<1x32xf32, #tpu.memory_space<vmem>>, vector<1x32xf32>
      %39 = vector.broadcast %38 : vector<1x32xf32> to vector<16x32xf32>
      %40 = arith.addf %37, %39 : vector<16x32xf32>
      %41 = arith.truncf %40 : vector<16x32xf32> to vector<16x32xbf16>
      %c0_25 = arith.constant 0 : index
      %c0_26 = arith.constant 0 : index
      %42 = vector.load %arg8[%c0_25, %c0_26] : memref<16x32xbf16, #tpu.memory_space<vmem>>, vector<16x32xbf16>
      tpu.vector_store %arg8[%c0_25, %c0_26], %41 {strides = array<i32>} : memref<16x32xbf16, #tpu.memory_space<vmem>>, vector<16x32xbf16>,
    } else {
    }
    return
  }
  func.func @transform_0(%arg0: i32, %arg1: i32) -> (i32, i32) {
    %c0_i32 = arith.constant 0 : i32
    return %arg0, %arg1 : i32, i32
  }
  func.func @transform_1(%arg0: i32, %arg1: i32) -> (i32, i32) {
    %c0_i32 = arith.constant 0 : i32
    %c0_i32_0 = arith.constant 0 : i32
    return %arg1, %c0_i32 : i32, i32
  }
  func.func @transform_2(%arg0: i32, %arg1: i32) -> (i32, i32) {
    %c0_i32 = arith.constant 0 : i32
    %c0_i32_0 = arith.constant 0 : i32
    %c0_i32_1 = arith.constant 0 : i32
    return %c0_i32, %c0_i32_0 : i32, i32
  }
  func.func @transform_3(%arg0: i32, %arg1: i32) -> (i32, i32) {
    %c0_i32 = arith.constant 0 : i32
    %c0_i32_0 = arith.constant 0 : i32
    return %arg0, %c0_i32 : i32, i32
  }
  func.func @transform_4(%arg0: i32, %arg1: i32) -> (i32, i32) {
    %c0_i32 = arith.constant 0 : i32
    %c0_i32_0 = arith.constant 0 : i32
    %c0_i32_1 = arith.constant 0 : i32
    return %c0_i32, %c0_i32_0 : i32, i32
  }
  func.func @transform_5(%arg0: i32, %arg1: i32) -> (i32, i32) {
    %c0_i32 = arith.constant 0 : i32
    %c0_i32_0 = arith.constant 0 : i32
    %c0_i32_1 = arith.constant 0 : i32
    return %c0_i32, %c0_i32_0 : i32, i32
  }
  func.func @transform_6(%arg0: i32, %arg1: i32) -> (i32, i32) {
    %c0_i32 = arith.constant 0 : i32
    %c0_i32_0 = arith.constant 0 : i32
    return %arg0, %c0_i32 : i32, i32
  }
}

module attributes {stable_mosaic.version = 11 : i64} {
  func.func @_linear_kernel(%arg0: i32, %arg1: i32, %arg2: i32, %arg3: memref<16x32xbf16, #tpu.memory_space<vmem>>, %arg4: memref<32x32xbf16, #tpu.memory_space<vmem>>, %arg5: memref<1x32xf32, #tpu.memory_space<vmem>>, %arg6: memref<16x32xbf16, #tpu.memory_space<vmem>>, %arg7: memref<16x32xf32, #tpu.memory_space<vmem>>) attributes {dimension_semantics = [#tpu.dimension_semantics<parallel>, #tpu.dimension_semantics<parallel>, #tpu.dimension_semantics<arbitrary>], iteration_bounds = array<i64: 1, 1, 1>, scalar_prefetch = 0 : i64, scratch_operands = 1 : i64, tpu.core_type = #tpu.core_type<tc>, window_params = [{transform_indices = @transform_0, window_bounds = array<i64: 16, 32>}, {transform_indices = @transform_1, window_bounds = array<i64: 32, 32>}, {transform_indices = @transform_2, window_bounds = array<i64: 1, 32>}, {transform_indices = @transform_3, window_bounds = array<i64: 16, 32>}]} {
    %c0_i32 = arith.constant 0 : i32
    %0 = arith.cmpi eq, %arg2, %c0_i32 : i32
    %1 = arith.extui %0 : i1 to i32
    %c0_i32_0 = arith.constant 0 : i32
    %2 = arith.cmpi ne, %1, %c0_i32_0 : i32
    scf.if %2 {
      %cst_10 = arith.constant 0.000000e+00 : f32
      %12 = vector.broadcast %cst_10 : f32 to vector<16x32xf32>
      %c0_11 = arith.constant 0 : index
      %c0_12 = arith.constant 0 : index
      %13 = vector.load %arg7[%c0_11, %c0_12] : memref<16x32xf32, #tpu.memory_space<vmem>>, vector<16x32xf32>
      tpu.vector_store %arg7[%c0_11, %c0_12], %12 {strides = array<i32>} : memref<16x32xf32, #tpu.memory_space<vmem>>, vector<16x32xf32>,
    } else {
    }
    %c0 = arith.constant 0 : index
    %c0_1 = arith.constant 0 : index
    %3 = vector.load %arg7[%c0, %c0_1] : memref<16x32xf32, #tpu.memory_space<vmem>>, vector<16x32xf32>
    %c0_2 = arith.constant 0 : index
    %c0_3 = arith.constant 0 : index
    %4 = vector.load %arg3[%c0_2, %c0_3] : memref<16x32xbf16, #tpu.memory_space<vmem>>, vector<16x32xbf16>
    %c0_4 = arith.constant 0 : index
    %c0_5 = arith.constant 0 : index
    %5 = vector.load %arg4[%c0_4, %c0_5] : memref<32x32xbf16, #tpu.memory_space<vmem>>, vector<32x32xbf16>
    %cst = arith.constant dense<0.000000e+00> : vector<16x32xf32>
    %6 = tpu.matmul %4, %5, %cst {dimension_numbers = #tpu.dot_dimension_numbers<[1], [0], [0], [1], [0, 0, 1, 1], [], []>} : vector<16x32xbf16>, vector<32x32xbf16>, vector<16x32xf32> -> vector<16x32xf32>
    %7 = arith.addf %3, %6 : vector<16x32xf32>
    %c0_6 = arith.constant 0 : index
    %c0_7 = arith.constant 0 : index
    %8 = vector.load %arg7[%c0_6, %c0_7] : memref<16x32xf32, #tpu.memory_space<vmem>>, vector<16x32xf32>
    tpu.vector_store %arg7[%c0_6, %c0_7], %7 {strides = array<i32>} : memref<16x32xf32, #tpu.memory_space<vmem>>, vector<16x32xf32>,
    %c0_i32_8 = arith.constant 0 : i32
    %9 = arith.cmpi eq, %arg2, %c0_i32_8 : i32
    %10 = arith.extui %9 : i1 to i32
    %c0_i32_9 = arith.constant 0 : i32
    %11 = arith.cmpi ne, %10, %c0_i32_9 : i32
    scf.if %11 {
      %c0_10 = arith.constant 0 : index
      %c0_11 = arith.constant 0 : index
      %12 = vector.load %arg7[%c0_10, %c0_11] : memref<16x32xf32, #tpu.memory_space<vmem>>, vector<16x32xf32>
      %c0_12 = arith.constant 0 : index
      %c0_13 = arith.constant 0 : index
      %13 = vector.load %arg5[%c0_12, %c0_13] : memref<1x32xf32, #tpu.memory_space<vmem>>, vector<1x32xf32>
      %14 = vector.broadcast %13 : vector<1x32xf32> to vector<16x32xf32>
      %15 = arith.addf %12, %14 : vector<16x32xf32>
      %cst_14 = arith.constant 5.000000e-01 : f32
      %16 = vector.broadcast %cst_14 : f32 to vector<16x32xf32>
      %17 = arith.mulf %15, %16 : vector<16x32xf32>
      %cst_15 = arith.constant 0.707106769 : f32
      %18 = vector.broadcast %cst_15 : f32 to vector<16x32xf32>
      %19 = arith.mulf %15, %18 : vector<16x32xf32>
      %20 = math.absf %19 : vector<16x32xf32>
      %cst_16 = arith.constant 0.327591091 : f32
      %21 = vector.broadcast %cst_16 : f32 to vector<16x32xf32>
      %22 = arith.mulf %21, %20 : vector<16x32xf32>
      %cst_17 = arith.constant 1.000000e+00 : f32
      %23 = vector.broadcast %cst_17 : f32 to vector<16x32xf32>
      %24 = arith.addf %23, %22 : vector<16x32xf32>
      %cst_18 = arith.constant 1.000000e+00 : f32
      %25 = vector.broadcast %cst_18 : f32 to vector<16x32xf32>
      %26 = arith.divf %25, %24 : vector<16x32xf32>
      %cst_19 = arith.constant 1.06140542 : f32
      %27 = vector.broadcast %cst_19 : f32 to vector<16x32xf32>
      %28 = arith.mulf %27, %26 : vector<16x32xf32>
      %cst_20 = arith.constant -1.45315206 : f32
      %29 = vector.broadcast %cst_20 : f32 to vector<16x32xf32>
      %30 = arith.addf %28, %29 : vector<16x32xf32>
      %31 = arith.mulf %30, %26 : vector<16x32xf32>
      %cst_21 = arith.constant 1.42141378 : f32
      %32 = vector.broadcast %cst_21 : f32 to vector<16x32xf32>
      %33 = arith.addf %31, %32 : vector<16x32xf32>
      %34 = arith.mulf %33, %26 : vector<16x32xf32>
      %cst_22 = arith.constant -0.284496725 : f32
      %35 = vector.broadcast %cst_22 : f32 to vector<16x32xf32>
      %36 = arith.addf %34, %35 : vector<16x32xf32>
      %37 = arith.mulf %36, %26 : vector<16x32xf32>
      %cst_23 = arith.constant 0.254829586 : f32
      %38 = vector.broadcast %cst_23 : f32 to vector<16x32xf32>
      %39 = arith.addf %37, %38 : vector<16x32xf32>
      %40 = arith.mulf %39, %26 : vector<16x32xf32>
      %cst_24 = arith.constant 0.000000e+00 : f32
      %41 = vector.broadcast %cst_24 : f32 to vector<16x32xf32>
      %42 = arith.subf %41, %20 : vector<16x32xf32>
      %43 = arith.mulf %42, %20 : vector<16x32xf32>
      %44 = math.exp %43 : vector<16x32xf32>
      %45 = arith.mulf %40, %44 : vector<16x32xf32>
      %cst_25 = arith.constant 1.000000e+00 : f32
      %46 = vector.broadcast %cst_25 : f32 to vector<16x32xf32>
      %47 = arith.subf %46, %45 : vector<16x32xf32>
      %cst_26 = arith.constant 0.000000e+00 : f32
      %48 = vector.broadcast %cst_26 : f32 to vector<16x32xf32>
      %49 = arith.cmpf oge, %19, %48 : vector<16x32xf32>
      %cst_27 = arith.constant 0.000000e+00 : f32
      %50 = vector.broadcast %cst_27 : f32 to vector<16x32xf32>
      %51 = arith.subf %50, %47 : vector<16x32xf32>
      %52 = arith.select %49, %47, %51 : vector<16x32xi1>, vector<16x32xf32>
      %cst_28 = arith.constant 1.000000e+00 : f32
      %53 = vector.broadcast %cst_28 : f32 to vector<16x32xf32>
      %54 = arith.addf %53, %52 : vector<16x32xf32>
      %55 = arith.mulf %17, %54 : vector<16x32xf32>
      %56 = arith.truncf %55 : vector<16x32xf32> to vector<16x32xbf16>
      %c0_29 = arith.constant 0 : index
      %c0_30 = arith.constant 0 : index
      %57 = vector.load %arg6[%c0_29, %c0_30] : memref<16x32xbf16, #tpu.memory_space<vmem>>, vector<16x32xbf16>
      tpu.vector_store %arg6[%c0_29, %c0_30], %56 {strides = array<i32>} : memref<16x32xbf16, #tpu.memory_space<vmem>>, vector<16x32xbf16>,
    } else {
    }
    return
  }
  func.func @transform_0(%arg0: i32, %arg1: i32, %arg2: i32) -> (i32, i32) {
    %c0_i32 = arith.constant 0 : i32
    return %arg0, %arg2 : i32, i32
  }
  func.func @transform_1(%arg0: i32, %arg1: i32, %arg2: i32) -> (i32, i32) {
    %c0_i32 = arith.constant 0 : i32
    return %arg2, %arg1 : i32, i32
  }
  func.func @transform_2(%arg0: i32, %arg1: i32, %arg2: i32) -> (i32, i32) {
    %c0_i32 = arith.constant 0 : i32
    %c0_i32_0 = arith.constant 0 : i32
    return %c0_i32, %arg1 : i32, i32
  }
  func.func @transform_3(%arg0: i32, %arg1: i32, %arg2: i32) -> (i32, i32) {
    %c0_i32 = arith.constant 0 : i32
    return %arg0, %arg1 : i32, i32
  }
}

module attributes {stable_mosaic.version = 11 : i64} {
  func.func @_dec_ce_kernel(%arg0: i32, %arg1: memref<16x32xbf16, #tpu.memory_space<vmem>>, %arg2: memref<2x32xbf16, #tpu.memory_space<vmem>>, %arg3: memref<32x128xbf16, #tpu.memory_space<vmem>>, %arg4: memref<1x128xf32, #tpu.memory_space<vmem>>, %arg5: memref<16x1xi32, #tpu.memory_space<vmem>>, %arg6: memref<16x1xf32, #tpu.memory_space<vmem>>, %arg7: memref<16x1xf32, #tpu.memory_space<vmem>>, %arg8: memref<2x128xf32, #tpu.memory_space<vmem>>, %arg9: memref<16x1xf32, #tpu.memory_space<vmem>>, %arg10: memref<16x1xf32, #tpu.memory_space<vmem>>, %arg11: memref<16x1xf32, #tpu.memory_space<vmem>>) attributes {dimension_semantics = [#tpu.dimension_semantics<arbitrary>], iteration_bounds = array<i64: 1>, scalar_prefetch = 0 : i64, scratch_operands = 3 : i64, tpu.core_type = #tpu.core_type<tc>, window_params = [{pipeline_mode = #tpu.pipeline_mode<synchronous>, transform_indices = @transform_0, window_bounds = array<i64: 16, 32>}, {pipeline_mode = #tpu.pipeline_mode<synchronous>, transform_indices = @transform_1, window_bounds = array<i64: 2, 32>}, {transform_indices = @transform_2, window_bounds = array<i64: 32, 128>}, {transform_indices = @transform_3, window_bounds = array<i64: 1, 128>}, {pipeline_mode = #tpu.pipeline_mode<synchronous>, transform_indices = @transform_4, window_bounds = array<i64: 16, 1>}, {pipeline_mode = #tpu.pipeline_mode<synchronous>, transform_indices = @transform_5, window_bounds = array<i64: 16, 1>}, {pipeline_mode = #tpu.pipeline_mode<synchronous>, transform_indices = @transform_6, window_bounds = array<i64: 16, 1>}, {transform_indices = @transform_7, window_bounds = array<i64: 2, 128>}]} {
    %c0_i32 = arith.constant 0 : i32
    %0 = arith.cmpi eq, %arg0, %c0_i32 : i32
    %1 = arith.extui %0 : i1 to i32
    %c0_i32_0 = arith.constant 0 : i32
    %2 = arith.cmpi ne, %1, %c0_i32_0 : i32
    scf.if %2 {
      %cst_32 = arith.constant 0xFF800000 : f32
      %49 = vector.broadcast %cst_32 : f32 to vector<16x1xf32>
      %c0_33 = arith.constant 0 : index
      %c0_34 = arith.constant 0 : index
      %50 = vector.load %arg9[%c0_33, %c0_34] : memref<16x1xf32, #tpu.memory_space<vmem>>, vector<16x1xf32>
      tpu.vector_store %arg9[%c0_33, %c0_34], %49 {strides = array<i32>} : memref<16x1xf32, #tpu.memory_space<vmem>>, vector<16x1xf32>,
      %cst_35 = arith.constant 0.000000e+00 : f32
      %51 = vector.broadcast %cst_35 : f32 to vector<16x1xf32>
      %c0_36 = arith.constant 0 : index
      %c0_37 = arith.constant 0 : index
      %52 = vector.load %arg10[%c0_36, %c0_37] : memref<16x1xf32, #tpu.memory_space<vmem>>, vector<16x1xf32>
      tpu.vector_store %arg10[%c0_36, %c0_37], %51 {strides = array<i32>} : memref<16x1xf32, #tpu.memory_space<vmem>>, vector<16x1xf32>,
      %cst_38 = arith.constant 0.000000e+00 : f32
      %53 = vector.broadcast %cst_38 : f32 to vector<16x1xf32>
      %c0_39 = arith.constant 0 : index
      %c0_40 = arith.constant 0 : index
      %54 = vector.load %arg11[%c0_39, %c0_40] : memref<16x1xf32, #tpu.memory_space<vmem>>, vector<16x1xf32>
      tpu.vector_store %arg11[%c0_39, %c0_40], %53 {strides = array<i32>} : memref<16x1xf32, #tpu.memory_space<vmem>>, vector<16x1xf32>,
    } else {
    }
    %c0 = arith.constant 0 : index
    %c0_1 = arith.constant 0 : index
    %3 = vector.load %arg3[%c0, %c0_1] : memref<32x128xbf16, #tpu.memory_space<vmem>>, vector<32x128xbf16>
    %c0_2 = arith.constant 0 : index
    %c0_3 = arith.constant 0 : index
    %4 = vector.load %arg4[%c0_2, %c0_3] : memref<1x128xf32, #tpu.memory_space<vmem>>, vector<1x128xf32>
    %c0_4 = arith.constant 0 : index
    %c0_5 = arith.constant 0 : index
    %5 = vector.load %arg1[%c0_4, %c0_5] : memref<16x32xbf16, #tpu.memory_space<vmem>>, vector<16x32xbf16>
    %cst = arith.constant dense<0.000000e+00> : vector<16x128xf32>
    %6 = tpu.matmul %5, %3, %cst {dimension_numbers = #tpu.dot_dimension_numbers<[1], [0], [0], [1], [0, 0, 1, 1], [], []>} : vector<16x32xbf16>, vector<32x128xbf16>, vector<16x128xf32> -> vector<16x128xf32>
    %7 = vector.broadcast %4 : vector<1x128xf32> to vector<16x128xf32>
    %8 = arith.addf %6, %7 : vector<16x128xf32>
    %c0_6 = arith.constant 0 : index
    %c0_7 = arith.constant 0 : index
    %9 = vector.load %arg5[%c0_6, %c0_7] : memref<16x1xi32, #tpu.memory_space<vmem>>, vector<16x1xi32>
    %10 = tpu.iota {dimensions = array<i32: 1>} : vector<16x128xi32>
    %c128_i32 = arith.constant 128 : i32
    %11 = arith.muli %arg0, %c128_i32 : i32
    %12 = vector.broadcast %11 : i32 to vector<16x128xi32>
    %13 = arith.addi %10, %12 : vector<16x128xi32>
    %14 = vector.broadcast %9 : vector<16x1xi32> to vector<16x128xi32>
    %15 = arith.cmpi eq, %13, %14 : vector<16x128xi32>
    %16 = arith.extui %15 : vector<16x128xi1> to vector<16x128xi32>
    %17 = arith.sitofp %16 : vector<16x128xi32> to vector<16x128xf32>
    %c0_8 = arith.constant 0 : index
    %c0_9 = arith.constant 0 : index
    %18 = vector.load %arg11[%c0_8, %c0_9] : memref<16x1xf32, #tpu.memory_space<vmem>>, vector<16x1xf32>
    %19 = arith.mulf %8, %17 : vector<16x128xf32>
    %cst_10 = arith.constant dense<0.000000e+00> : vector<16xf32>
    %20 = vector.multi_reduction <add>, %19, %cst_10 [1] : vector<16x128xf32> to vector<16xf32>
    %21 = vector.shape_cast %20 : vector<16xf32> to vector<16x1xf32>
    %22 = arith.addf %18, %21 : vector<16x1xf32>
    %c0_11 = arith.constant 0 : index
    %c0_12 = arith.constant 0 : index
    %23 = vector.load %arg11[%c0_11, %c0_12] : memref<16x1xf32, #tpu.memory_space<vmem>>, vector<16x1xf32>
    tpu.vector_store %arg11[%c0_11, %c0_12], %22 {strides = array<i32>} : memref<16x1xf32, #tpu.memory_space<vmem>>, vector<16x1xf32>,
    %c0_13 = arith.constant 0 : index
    %c0_14 = arith.constant 0 : index
    %24 = vector.load %arg9[%c0_13, %c0_14] : memref<16x1xf32, #tpu.memory_space<vmem>>, vector<16x1xf32>
    %cst_15 = arith.constant dense<0xFF800000> : vector<16xf32>
    %25 = vector.multi_reduction <maximumf>, %8, %cst_15 [1] : vector<16x128xf32> to vector<16xf32>
    %26 = vector.shape_cast %25 : vector<16xf32> to vector<16x1xf32>
    %27 = arith.maximumf %24, %26 : vector<16x1xf32>
    %c0_16 = arith.constant 0 : index
    %c0_17 = arith.constant 0 : index
    %28 = vector.load %arg10[%c0_16, %c0_17] : memref<16x1xf32, #tpu.memory_space<vmem>>, vector<16x1xf32>
    %c0_18 = arith.constant 0 : index
    %c0_19 = arith.constant 0 : index
    %29 = vector.load %arg9[%c0_18, %c0_19] : memref<16x1xf32, #tpu.memory_space<vmem>>, vector<16x1xf32>
    %30 = arith.subf %29, %27 : vector<16x1xf32>
    %31 = math.exp %30 : vector<16x1xf32>
    %32 = arith.mulf %28, %31 : vector<16x1xf32>
    %33 = vector.broadcast %27 : vector<16x1xf32> to vector<16x128xf32>
    %34 = arith.subf %8, %33 : vector<16x128xf32>
    %35 = math.exp %34 : vector<16x128xf32>
    %cst_20 = arith.constant dense<0.000000e+00> : vector<16xf32>
    %36 = vector.multi_reduction <add>, %35, %cst_20 [1] : vector<16x128xf32> to vector<16xf32>
    %37 = vector.shape_cast %36 : vector<16xf32> to vector<16x1xf32>
    %38 = arith.addf %32, %37 : vector<16x1xf32>
    %c0_21 = arith.constant 0 : index
    %c0_22 = arith.constant 0 : index
    %39 = vector.load %arg10[%c0_21, %c0_22] : memref<16x1xf32, #tpu.memory_space<vmem>>, vector<16x1xf32>
    tpu.vector_store %arg10[%c0_21, %c0_22], %38 {strides = array<i32>} : memref<16x1xf32, #tpu.memory_space<vmem>>, vector<16x1xf32>,
    %c0_23 = arith.constant 0 : index
    %c0_24 = arith.constant 0 : index
    %40 = vector.load %arg9[%c0_23, %c0_24] : memref<16x1xf32, #tpu.memory_space<vmem>>, vector<16x1xf32>
    tpu.vector_store %arg9[%c0_23, %c0_24], %27 {strides = array<i32>} : memref<16x1xf32, #tpu.memory_space<vmem>>, vector<16x1xf32>,
    %c0_25 = arith.constant 0 : index
    %c0_26 = arith.constant 0 : index
    %41 = vector.load %arg2[%c0_25, %c0_26] : memref<2x32xbf16, #tpu.memory_space<vmem>>, vector<2x32xbf16>
    %cst_27 = arith.constant dense<0.000000e+00> : vector<2x128xf32>
    %42 = tpu.matmul %41, %3, %cst_27 {dimension_numbers = #tpu.dot_dimension_numbers<[1], [0], [0], [1], [0, 0, 1, 1], [], []>} : vector<2x32xbf16>, vector<32x128xbf16>, vector<2x128xf32> -> vector<2x128xf32>
    %43 = vector.broadcast %4 : vector<1x128xf32> to vector<2x128xf32>
    %44 = arith.addf %42, %43 : vector<2x128xf32>
    %c0_28 = arith.constant 0 : index
    %c0_29 = arith.constant 0 : index
    %45 = vector.load %arg8[%c0_28, %c0_29] : memref<2x128xf32, #tpu.memory_space<vmem>>, vector<2x128xf32>
    tpu.vector_store %arg8[%c0_28, %c0_29], %44 {strides = array<i32>} : memref<2x128xf32, #tpu.memory_space<vmem>>, vector<2x128xf32>,
    %c0_i32_30 = arith.constant 0 : i32
    %46 = arith.cmpi eq, %arg0, %c0_i32_30 : i32
    %47 = arith.extui %46 : i1 to i32
    %c0_i32_31 = arith.constant 0 : i32
    %48 = arith.cmpi ne, %47, %c0_i32_31 : i32
    scf.if %48 {
      %c-100_i32 = arith.constant -100 : i32
      %49 = vector.broadcast %c-100_i32 : i32 to vector<16x1xi32>
      %50 = arith.cmpi ne, %9, %49 : vector<16x1xi32>
      %51 = arith.extui %50 : vector<16x1xi1> to vector<16x1xi32>
      %52 = arith.sitofp %51 : vector<16x1xi32> to vector<16x1xf32>
      %c0_32 = arith.constant 0 : index
      %c0_33 = arith.constant 0 : index
      %53 = vector.load %arg9[%c0_32, %c0_33] : memref<16x1xf32, #tpu.memory_space<vmem>>, vector<16x1xf32>
      %c0_34 = arith.constant 0 : index
      %c0_35 = arith.constant 0 : index
      %54 = vector.load %arg10[%c0_34, %c0_35] : memref<16x1xf32, #tpu.memory_space<vmem>>, vector<16x1xf32>
      %55 = math.log %54 : vector<16x1xf32>
      %56 = arith.addf %53, %55 : vector<16x1xf32>
      %c0_36 = arith.constant 0 : index
      %c0_37 = arith.constant 0 : index
      %57 = vector.load %arg11[%c0_36, %c0_37] : memref<16x1xf32, #tpu.memory_space<vmem>>, vector<16x1xf32>
      %58 = arith.subf %56, %57 : vector<16x1xf32>
      %59 = arith.mulf %58, %52 : vector<16x1xf32>
      %c0_38 = arith.constant 0 : index
      %c0_39 = arith.constant 0 : index
      %60 = vector.load %arg6[%c0_38, %c0_39] : memref<16x1xf32, #tpu.memory_space<vmem>>, vector<16x1xf32>
      tpu.vector_store %arg6[%c0_38, %c0_39], %59 {strides = array<i32>} : memref<16x1xf32, #tpu.memory_space<vmem>>, vector<16x1xf32>,
      %c0_40 = arith.constant 0 : index
      %c0_41 = arith.constant 0 : index
      %61 = vector.load %arg7[%c0_40, %c0_41] : memref<16x1xf32, #tpu.memory_space<vmem>>, vector<16x1xf32>
      tpu.vector_store %arg7[%c0_40, %c0_41], %52 {strides = array<i32>} : memref<16x1xf32, #tpu.memory_space<vmem>>, vector<16x1xf32>,
    } else {
    }
    return
  }
  func.func @transform_0(%arg0: i32) -> (i32, i32) {
    %c0_i32 = arith.constant 0 : i32
    %c0_i32_0 = arith.constant 0 : i32
    %c0_i32_1 = arith.constant 0 : i32
    return %c0_i32, %c0_i32_0 : i32, i32
  }
  func.func @transform_1(%arg0: i32) -> (i32, i32) {
    %c0_i32 = arith.constant 0 : i32
    %c0_i32_0 = arith.constant 0 : i32
    %c0_i32_1 = arith.constant 0 : i32
    return %c0_i32, %c0_i32_0 : i32, i32
  }
  func.func @transform_2(%arg0: i32) -> (i32, i32) {
    %c0_i32 = arith.constant 0 : i32
    %c0_i32_0 = arith.constant 0 : i32
    return %c0_i32, %arg0 : i32, i32
  }
  func.func @transform_3(%arg0: i32) -> (i32, i32) {
    %c0_i32 = arith.constant 0 : i32
    %c0_i32_0 = arith.constant 0 : i32
    return %c0_i32, %arg0 : i32, i32
  }
  func.func @transform_4(%arg0: i32) -> (i32, i32) {
    %c0_i32 = arith.constant 0 : i32
    %c0_i32_0 = arith.constant 0 : i32
    %c0_i32_1 = arith.constant 0 : i32
    return %c0_i32, %c0_i32_0 : i32, i32
  }
  func.func @transform_5(%arg0: i32) -> (i32, i32) {
    %c0_i32 = arith.constant 0 : i32
    %c0_i32_0 = arith.constant 0 : i32
    %c0_i32_1 = arith.constant 0 : i32
    return %c0_i32, %c0_i32_0 : i32, i32
  }
  func.func @transform_6(%arg0: i32) -> (i32, i32) {
    %c0_i32 = arith.constant 0 : i32
    %c0_i32_0 = arith.constant 0 : i32
    %c0_i32_1 = arith.constant 0 : i32
    return %c0_i32, %c0_i32_0 : i32, i32
  }
  func.func @transform_7(%arg0: i32) -> (i32, i32) {
    %c0_i32 = arith.constant 0 : i32
    %c0_i32_0 = arith.constant 0 : i32
    return %c0_i32, %arg0 : i32, i32
  }
}

</mosaic_0001>

<bundles_post_ra>
// kernel: model_forward.15
= control target key start
LH: loop header
LB: loop body
LE: loop exit
PB: predicated region body
PF: predicated region fallthrough
CT: control target
= control target key end

     0   :  { %vm19_vm0 = vcmask 785408   ;;  %v151_v0 = vmov 0.0   ;;  %vm152_vm1 = vmmov 0   ;;  %vm47_vm2 = vcmask 261120   ;;  %s195_s1 = inlined_call_operand.vmem [shape: bf16[32,96], index: 1, kind: input, shape index: {}]   ;;  %s196_s0 = inlined_call_operand.vmem [shape: bf16[16,32], index: 0, kind: input, shape index: {}]   ;;  %s197_s2 = inlined_call_operand.vmem [shape: f32[1,96], index: 2, kind: input, shape index: {}]   ;;  %s198_s3 = inlined_call_operand.vmem [shape: bf16[16,96], index: 3, kind: output, shape index: {}]  }
   0x1   :  { %138 = vmatprep.subr.bf16.mxu0 %v151_v0  ;;  %v148_v1 = vld [vmem:[%s195_s1 + $0x8] sm:$0xff]   ;;  %142 = vmatprep.mubr.msk.bf16.mxu0 %vm152_vm1, %v151_v0  ;;  %20 = vst.msk [vmem:[#allocation2] sm:$0xff] %vm19_vm0, %v151_v0  ;;  %21 = vst.msk [vmem:[#allocation2 + $0x8] sm:$0xff] %vm19_vm0, %v151_v0  ;;  %v149_v2 = vld [vmem:[%s195_s1] sm:$0xff]   ;;  %vm119_vm3 = vcmask 781312  }
   0x2   :  { %139 = vmatpush3.bf16.msra.mxu0 %v148_v1  ;;  %v150_v3 = vld [vmem:[%s196_s0] sm:$0xff]  }
   0x3   :  { %140 = vmatprep.subr.bf16.mxu0 %v151_v0  ;;  %v130_v12 = vld [vmem:[%s197_s2] ss:$0 sm:$0xff] }
   0x6   :  { %141 = vmatpush3.bf16.msra.mxu0 %v149_v2 }
   0x8   :  { %v22_v4 = vld [vmem:[#allocation2] sm:$0xff]  ;;  %v23_v8 = vld [vmem:[#allocation2 + $0x8] sm:$0xff] }
   0x9   :  { %143 = vmatmul.mubr.msk.bf16.vlgmr.msra.gmra.mxu0 %vm47_vm2, %v150_v3 }
  0xc9   :  { %v85_v5 = vpop.f32.mrf.mxu0 }
  0xca   :  { %v92_v6 = vadd.f32 %v85_v5, %v22_v4 }
  0xcb   :  { %v144_v7 = vpop.f32.mrf.mxu0 }
  0xcc   :  { %95 = vst.msk [vmem:[#allocation2] sm:$0xff] %vm19_vm0, %v92_v6 }
  0xcd   :  { %v88_v9 = vpop.f32.mrf.mxu0 }
  0xce   :  { %v93_v10 = vadd.f32 %v88_v9, %v23_v8 }
  0xcf   :  { %v145_v11 = vpop.f32.mrf.mxu0 }
  0xd0   :  { %96 = vst.msk [vmem:[#allocation2 + $0x8] sm:$0xff] %vm19_vm0, %v93_v10 }
  0xd3   :  { %v100_v13 = vld [vmem:[#allocation2] sm:$0xff] }
  0xd4   :  { %v109_v14 = vadd.f32 %v130_v12, %v100_v13 }
  0xd6   :  { %v133_v15 = vpack.c.bf16 %v109_v14, %v109_v14 }
  0xd7   :  { %v101_v16 = vld [vmem:[#allocation2 + $0x8] sm:$0xff] }
  0xd8   :  { %120 = vst.msk [vmem:[%s198_s3] sm:$0xf] %vm119_vm3, %v133_v15  ;;  %v110_v17 = vadd.f32 %v130_v12, %v101_v16 }
  0xda   :  { %v134_v18 = vpack.c.bf16 %v110_v17, %v110_v17 }
  0xdc   :  { %121 = vst.msk [vmem:[%s198_s3 + $0x4] sm:$0xf] %vm119_vm3, %v134_v18 }

// kernel: model_forward.14
= control target key start
LH: loop header
LB: loop body
LE: loop exit
PB: predicated region body
PF: predicated region fallthrough
CT: control target
= control target key end

     0   :  { %vm18_vm0 = vcmask 261120   ;;  %vm72_vm1 = vcmask 257024   ;;  %s132_s0 = inlined_call_operand.vmem [shape: bf16[16,32], index: 0, kind: input, shape index: {}]   ;;  %s133_s1 = inlined_call_operand.vmem [shape: f32[1,32], index: 1, kind: input, shape index: {}]   ;;  %s134_s2 = inlined_call_operand.vmem [shape: f32[1,32], index: 2, kind: input, shape index: {}]   ;;  %s135_s3 = inlined_call_operand.vmem [shape: bf16[16,32], index: 3, kind: output, shape index: {}]  }
   0x1   :  { %v86_v0 = vld [vmem:[%s132_s0] sm:$0xff]  }
   0x2   :  { %v87_v1 = vunpack.c.l.bf16 %v86_v0  ;;  %v88_v2 = vunpack.c.h.bf16 %v86_v0  ;;  %v79_v22 = vld [vmem:[%s133_s1] ss:$0 sm:$0xff] }
   0x3   :  { %v80_v24 = vld [vmem:[%s134_s2] ss:$0 sm:$0xff] }
   0x4   :  { %v19_v3 = vsel %vm18_vm0, %v87_v1, 0.0  ;;  %v22_v4 = vsel %vm18_vm0, %v88_v2, 0.0 }
   0x5   :  { %20 = vadd.xlane.f32.xlu0 %v19_v3 }
   0x9   :  { %23 = vadd.xlane.f32.xlu0 %v22_v4 }
  0x8e   :  { %v21_v5 = vpop.xlane.xlu0 %20 }
  0x8f   :  { %v26_v6 = vmul.f32 0.03125, %v21_v5 }
  0x91   :  { %v28_v7 = vsub.f32 %v87_v1, %v26_v6 }
  0x92   :  { %v24_v8 = vpop.xlane.xlu0 %23 }
  0x93   :  { %v27_v9 = vmul.f32 0.03125, %v24_v8  ;;  %v30_v10 = vmul.f32 %v28_v7, %v28_v7 }
  0x95   :  { %v29_v11 = vsub.f32 %v88_v2, %v27_v9  ;;  %v32_v12 = vsel %vm18_vm0, %v30_v10, 0.0 }
  0x96   :  { %33 = vadd.xlane.f32.xlu1 %v32_v12 }
  0x97   :  { %v31_v13 = vmul.f32 %v29_v11, %v29_v11 }
  0x99   :  { %v35_v14 = vsel %vm18_vm0, %v31_v13, 0.0 }
  0x9a   :  { %36 = vadd.xlane.f32.xlu1 %v35_v14 }
 0x11f   :  { %v34_v15 = vpop.xlane.xlu1 %33 }
 0x120   :  { %v38_v16 = vmul.f32 0.03125, %v34_v15 }
 0x122   :  { %v40_v17 = vadd.f32 1e-12, %v38_v16 }
 0x123   :  { %v37_v18 = vpop.xlane.xlu1 %36 }
 0x124   :  { %89 = vrsqrt.f32 %v40_v17  ;;  %v39_v19 = vmul.f32 0.03125, %v37_v18 }
 0x126   :  { %v41_v20 = vadd.f32 1e-12, %v39_v19 }
 0x128   :  { %91 = vrsqrt.f32 %v41_v20 }
 0x131   :  { %v90_v21 = vpop.eup %89 }
 0x132   :  { %v44_v23 = vmul.f32 %v90_v21, %v28_v7 }
 0x134   :  { %v53_v25 = vmul.f32 %v79_v22, %v44_v23 }
 0x135   :  { %v92_v26 = vpop.eup %91 }
 0x136   :  { %v62_v27 = vadd.f32 %v80_v24, %v53_v25  ;;  %v45_v28 = vmul.f32 %v92_v26, %v29_v11 }
 0x138   :  { %v83_v29 = vpack.c.bf16 %v62_v27, %v62_v27  ;;  %v54_v30 = vmul.f32 %v79_v22, %v45_v28 }
 0x13a   :  { %73 = vst.msk [vmem:[%s135_s3] sm:$0xf] %vm72_vm1, %v83_v29  ;;  %v63_v31 = vadd.f32 %v80_v24, %v54_v30 }
 0x13c   :  { %v84_v32 = vpack.c.bf16 %v63_v31, %v63_v31 }
 0x13e   :  { %74 = vst.msk [vmem:[%s135_s3 + $0x4] sm:$0xf] %vm72_vm1, %v84_v32 }

// kernel: model_forward.16
= control target key start
LH: loop header
LB: loop body
LE: loop exit
PB: predicated region body
PF: predicated region fallthrough
CT: control target
= control target key end

     0   :  { %s864_s15 = smov 0   ;;  %s866_s16 = smov 0   ;;  %s944_s0 = inlined_call_operand.vmem [shape: bf16[2,4,8,8], index: 0, kind: input, shape index: {}]   ;;  %s945_s1 = inlined_call_operand.vmem [shape: bf16[2,4,8,8], index: 1, kind: input, shape index: {}]   ;;  %s946_s2 = inlined_call_operand.vmem [shape: bf16[2,4,8,8], index: 2, kind: input, shape index: {}]   ;;  %s947_s3 = inlined_call_operand.vmem [shape: f32[2,1,8], index: 3, kind: input, shape index: {}]   ;;  %s948_s4 = inlined_call_operand.vmem [shape: bf16[2,4,8,8], index: 4, kind: output, shape index: {}]  }
   0x1   :  { %s868_s17 = smov 0   ;;  %s870_s18 = smov 0  }
   0x2   :  { %s872_s19 = smov 0  }
   0x3 LB: > { %s23_s20 = sadd.s32 1, %s827_s17  ;;  %s26_s21 = sadd.s32 1, %s831_s18  ;;  %s835_s19 = sphi %s872_s19, %s14_s19   ;;  %s831_s18 = sphi %s870_s18, %s952_s18   ;;  %s827_s17 = sphi %s868_s17, %s951_s17   ;;  %s823_s16 = sphi %s866_s16, %s950_s16   ;;  %s819_s15 = sphi %s864_s15, %s949_s15  }
   0x4   : > { %p24_p0 = scmp.ge.s32.totalorder %s23_s20, 2  ;;  %p695_p1 = scmp.ge.s32.totalorder %s835_s19, 1 }
   0x5   : > { %p225_p2 = scmp.lt.s32.totalorder %s835_s19, 5 }
   0x6   : > { %s954_s20 = smov (%p24_p0, %s23_s20), 0  ;;  %s956_s21 = smov (!%p24_p0, %s26_s21), %s831_s18 }
   0x7   : > { %p226_p3 = pnand %p695_p1, %p225_p2  ;;  %p28_p4 = scmp.ge.s32.totalorder %s956_s21, 2 }
   0x8   : > { %s696_s22 = sshll.u32 (!%p226_p3), %s819_s15, 1  ;;  %p281_p5 = scmp.lt.s32.totalorder (!%p226_p3), %s823_s16, 1 }
   0x9   : > { %s958_s21 = smov (%p28_p4, %s956_s21), 0  ;;  %229 = sbr.rel (%p226_p3) target bundleno = 587 (0x24b), region = 36 }
   0xa   : > { %p283_p6 = scmp.lt.s32.totalorder (!%p226_p3), %s696_s22, 3 }
   0xe   : > { %v837_v0 = vmov 0.0   ;;  %s960_s16 = smov (!%p281_p5, %s823_s16), 1  ;;  %vm838_vm0 = vmmov 0   ;;  %s962_s22 = smov (!%p283_p6, %s696_s22), 3  ;;  %vm330_vm1 = vcmask 64512   ;;  %vm457_vm2 = vcmask 1043456  }
   0xf   : > { %723 = vmatprep.subr.bf16.mxu0 %v837_v0  ;;  %729 = vmatprep.subr.bf16.mxu1 %v837_v0  ;;  %s697_s23 = sshll.u32 %s960_s16, 2  ;;  %s312_s8 = scalar_lea.vmem %s947_s3, %s960_s16  ;;  %vm553_vm3 = vcmask 60416  }
  0x10   : > { %725 = vmatprep.mubr.msk.bf16.mxu0 %vm838_vm0, %v837_v0  ;;  %731 = vmatprep.mubr.msk.bf16.mxu1 %vm838_vm0, %v837_v0  ;;  %s286_s24 = sadd.s32 %s697_s23, %s962_s22  ;;  %v710_v9 = vld [vmem:[%s312_s8] ss:$0 sm:$0xff] }
  0x11   : > { %s896_s25 = sshll.u32 %s286_s24, 2 }
  0x12   : > { %s298_s28 = scalar_lea.vmem %s945_s1, %s896_s25  ;;  %s288_s5 = scalar_lea.vmem %s944_s0, %s896_s25 }
  0x13   : > { %v326_v1 = vld [vmem:[%s298_s28] sm:$0xf]  ;;  %v327_v2 = vld [vmem:[%s298_s28 + $0x4] sm:$0xf]  ;;  %s308_s11 = scalar_lea.vmem %s946_s2, %s896_s25  ;;  %s321_s14 = scalar_lea.vmem %s948_s4, %s896_s25 }
  0x14   : > { %v335_v3 = vsel %vm330_vm1, %v326_v1, 0  ;;  %v381_v4 = vsel %vm330_vm1, %v327_v2, 0  ;;  %v324_v5 = vld [vmem:[%s288_s5] sm:$0xf]  ;;  %v325_v6 = vld [vmem:[%s288_s5 + $0x4] sm:$0xf] }
  0x15   : > { %724 = vmatpush3.bf16.xpose.msra.mxu0 %v335_v3  ;;  %730 = vmatpush3.bf16.xpose.msra.mxu1 %v381_v4  ;;  %v328_v22 = vld [vmem:[%s308_s11] sm:$0xf]  ;;  %v329_v23 = vld [vmem:[%s308_s11 + $0x4] sm:$0xf] }
  0x16   : > { %735 = vmatprep.subr.bf16.mxu0 %v837_v0  ;;  %741 = vmatprep.subr.bf16.mxu1 %v837_v0  ;;  %v459_v24 = vsel %vm457_vm2, %v328_v22, 0  ;;  %v505_v25 = vsel %vm457_vm2, %v329_v23, 0 }
  0x1c   : > { %726 = vmatmul.mubr.msk.bf16.vlgmr.msra.gmra.mxu0 %vm330_vm1, %v324_v5  ;;  %732 = vmatmul.mubr.msk.bf16.vlgmr.msra.gmra.mxu1 %vm330_vm1, %v325_v6 }
  0x1d   : > { %737 = vmatprep.mubr.msk.bf16.mxu0 %vm838_vm0, %v837_v0  ;;  %743 = vmatprep.mubr.msk.bf16.mxu1 %vm838_vm0, %v837_v0 }
  0x1e   : > { %736 = vmatpush3.bf16.msra.mxu0 %v459_v24  ;;  %742 = vmatpush3.bf16.msra.mxu1 %v505_v25 }
  0xdc   : > { %v371_v7 = vpop.f32.mrf.mxu0  ;;  %v417_v8 = vpop.f32.mrf.mxu1 }
  0xdd   : > { %v423_v10 = vmul.f32 0.35355338, %v371_v7  ;;  %v424_v11 = vmul.f32 0.35355338, %v417_v8 }
  0xde   : > { %v727_v12 = vpop.f32.mrf.mxu0  ;;  %v733_v13 = vpop.f32.mrf.mxu1 }
  0xdf   : > { %v432_v14 = vadd.f32 %v710_v9, %v423_v10  ;;  %v433_v15 = vadd.f32 %v710_v9, %v424_v11 }
  0xe0   : > { %v374_v16 = vpop.f32.mrf.mxu0  ;;  %v420_v17 = vpop.f32.mrf.mxu1 }
  0xe1   : > { %v434_v18 = vsel %vm330_vm1, %v432_v14, -inf  ;;  %v437_v21 = vsel %vm330_vm1, %v433_v15, -inf }
  0xe2   : > { %v734_v19 = vpop.f32.mrf.mxu1  ;;  %435 = vmax.xlane.f32.xlu0 %v434_v18  ;;  %v728_v20 = vpop.f32.mrf.mxu0 }
  0xe6   : > { %438 = vmax.xlane.f32.xlu0 %v437_v21 }
 0x16b   : > { %v436_v26 = vpop.xlane.xlu0 %435 }
 0x16c   : > { %v440_v27 = vsub.f32 %v432_v14, %v436_v26 }
 0x16e   : > { %v442_v28 = vmul.f32 1.442695, %v440_v27 }
 0x16f   : > { %v439_v29 = vpop.xlane.xlu0 %438 }
 0x170   : > { %789 = vpow2.f32 %v442_v28  ;;  %v441_v30 = vsub.f32 %v433_v15, %v439_v29 }
 0x172   : > { %v444_v31 = vmul.f32 1.442695, %v441_v30 }
 0x174   : > { %791 = vpow2.f32 %v444_v31 }
 0x17d   : > { %v790_v32 = vpop.eup %789 }
 0x17e   : > { %v446_v33 = vsel %vm330_vm1, %v790_v32, 0.0  ;;  %v452_v34 = vpack.c.bf16 %v790_v32, %v790_v32 }
 0x17f   : > { %447 = vadd.xlane.f32.xlu1 %v446_v33 }
 0x180   : > { %738 = vmatmul.mubr.msk.bf16.vlgmr.msra.gmra.mxu0 %vm330_vm1, %v452_v34 }
 0x181   : > { %v792_v35 = vpop.eup %791 }
 0x182   : > { %v449_v36 = vsel %vm330_vm1, %v792_v35, 0.0  ;;  %v453_v37 = vpack.c.bf16 %v792_v35, %v792_v35 }
 0x183   : > { %450 = vadd.xlane.f32.xlu1 %v449_v36 }
 0x184   : > { %744 = vmatmul.mubr.msk.bf16.vlgmr.msra.gmra.mxu1 %vm330_vm1, %v453_v37 }
 0x208   : > { %v448_v38 = vpop.xlane.xlu1 %447 }
 0x209   : > { %793 = vrcp.f32 %v448_v38 }
 0x20c   : > { %v451_v39 = vpop.xlane.xlu1 %450 }
 0x20d   : > { %795 = vrcp.f32 %v451_v39 }
 0x216   : > { %v794_v40 = vpop.eup %793 }
 0x21a   : > { %v796_v45 = vpop.eup %795 }
 0x240   : > { %v495_v41 = vpop.f32.mrf.mxu0 }
 0x241   : > { %v548_v42 = vmul.f32 %v794_v40, %v495_v41 }
 0x242   : > { %v739_v43 = vpop.f32.mrf.mxu0 }
 0x243   : > { %v551_v44 = vpack.c.bf16 %v548_v42, %v548_v42 }
 0x244   : > { %v498_v46 = vpop.f32.mrf.mxu0  ;;  %v541_v47 = vpop.f32.mrf.mxu1 }
 0x245   : > { %554 = vst.msk [vmem:[%s321_s14] sm:$0xf] %vm553_vm3, %v551_v44  ;;  %v550_v48 = vmul.f32 %v796_v45, %v541_v47 }
 0x246   : > { %v740_v49 = vpop.f32.mrf.mxu0  ;;  %v745_v50 = vpop.f32.mrf.mxu1 }
 0x247   : > { %v552_v51 = vpack.c.bf16 %v550_v48, %v550_v48 }
 0x248   : > { %v544_v52 = vpop.f32.mrf.mxu1 }
 0x249   : > { %555 = vst.msk [vmem:[%s321_s14 + $0x4] sm:$0xf] %vm553_vm3, %v552_v51 }
 0x24a   : > { %v746_v53 = vpop.f32.mrf.mxu1 }
 0x24b PF: > { %s14_s19 = sadd.s32 1, %s835_s19   ;;  %s949_s15 = smov %s827_s17 }
 0x24c   : > { %p11_p7 = scmp.ge.s32.totalorder %s14_s19, 6   ;;  %s950_s16 = smov %s831_s18 }
 0x24d   : > { %s951_s17 = smov %s954_s20  ;;  %s952_s18 = smov %s958_s21 }
 0x24e   :  { %13 = sbr.rel (!%p11_p7) target bundleno = 3 (0x3), region = 75 }

// kernel: model_forward.18
= control target key start
LH: loop header
LB: loop body
LE: loop exit
PB: predicated region body
PF: predicated region fallthrough
CT: control target
= control target key end

     0   :  { %vm19_vm0 = vcmask 523264   ;;  %v213_v0 = vmov 0.0   ;;  %vm214_vm1 = vmmov 0   ;;  %vm47_vm2 = vcmask 261120   ;;  %s257_s1 = inlined_call_operand.vmem [shape: bf16[32,64], index: 1, kind: input, shape index: {}]   ;;  %s258_s0 = inlined_call_operand.vmem [shape: bf16[16,32], index: 0, kind: input, shape index: {}]   ;;  %s259_s2 = inlined_call_operand.vmem [shape: f32[1,64], index: 2, kind: input, shape index: {}]   ;;  %s260_s3 = inlined_call_operand.vmem [shape: bf16[16,64], index: 3, kind: output, shape index: {}]  }
   0x1   :  { %192 = vmatprep.subr.bf16.mxu0 %v213_v0  ;;  %v202_v1 = vld [vmem:[%s257_s1 + $0x8] sm:$0xff]   ;;  %196 = vmatprep.mubr.msk.bf16.mxu0 %vm214_vm1, %v213_v0  ;;  %20 = vst.msk [vmem:[#allocation2] sm:$0xff] %vm19_vm0, %v213_v0  ;;  %21 = vst.msk [vmem:[#allocation2 + $0x8] sm:$0xff] %vm19_vm0, %v213_v0  ;;  %v203_v2 = vld [vmem:[%s257_s1] sm:$0xff]   ;;  %vm173_vm5 = vcmask 519168  }
   0x2   :  { %193 = vmatpush3.bf16.msra.mxu0 %v202_v1  ;;  %v204_v3 = vld [vmem:[%s258_s0] sm:$0xff]  }
   0x3   :  { %194 = vmatprep.subr.bf16.mxu0 %v213_v0  ;;  %v184_v12 = vld [vmem:[%s259_s2] ss:$0 sm:$0xff] }
   0x6   :  { %195 = vmatpush3.bf16.msra.mxu0 %v203_v2 }
   0x8   :  { %v22_v4 = vld [vmem:[#allocation2] sm:$0xff]  ;;  %v23_v8 = vld [vmem:[#allocation2 + $0x8] sm:$0xff] }
   0x9   :  { %197 = vmatmul.mubr.msk.bf16.vlgmr.msra.gmra.mxu0 %vm47_vm2, %v204_v3 }
  0xc9   :  { %v85_v5 = vpop.f32.mrf.mxu0 }
  0xca   :  { %v92_v6 = vadd.f32 %v85_v5, %v22_v4 }
  0xcb   :  { %v198_v7 = vpop.f32.mrf.mxu0 }
  0xcc   :  { %95 = vst.msk [vmem:[#allocation2] sm:$0xff] %vm19_vm0, %v92_v6 }
  0xcd   :  { %v88_v9 = vpop.f32.mrf.mxu0 }
  0xce   :  { %v93_v10 = vadd.f32 %v88_v9, %v23_v8 }
  0xcf   :  { %v199_v11 = vpop.f32.mrf.mxu0 }
  0xd0   :  { %96 = vst.msk [vmem:[#allocation2 + $0x8] sm:$0xff] %vm19_vm0, %v93_v10 }
  0xd3   :  { %v100_v13 = vld [vmem:[#allocation2] sm:$0xff] }
  0xd4   :  { %v109_v14 = vadd.f32 %v184_v12, %v100_v13 }
  0xd6   :  { %v113_v15 = vmul.f32 0.70710677, %v109_v14  ;;  %v111_v59 = vmul.f32 0.5, %v109_v14 }
  0xd7   :  { %v101_v16 = vld [vmem:[#allocation2 + $0x8] sm:$0xff] }
  0xd8   :  { %v115_v17 = vand.u32 2147483647, %v113_v15  ;;  %v110_v18 = vadd.f32 %v184_v12, %v101_v16  ;;  %vm155_vm3 = vcmp.ge.f32.partialorder %v113_v15, 0.0 }
  0xda   :  { %v117_v19 = vmul.f32 0.3275911, %v115_v17  ;;  %v114_v20 = vmul.f32 0.70710677, %v110_v18  ;;  %v143_v25 = vsub.f32 0.0, %v115_v17  ;;  %v112_v1 = vmul.f32 0.5, %v110_v18 }
  0xdc   :  { %v119_v21 = vadd.f32 1.0, %v117_v19  ;;  %v116_v22 = vand.u32 2147483647, %v114_v20  ;;  %v145_v26 = vmul.f32 %v143_v25, %v115_v17  ;;  %vm156_vm4 = vcmp.ge.f32.partialorder %v114_v20, 0.0 }
  0xde   :  { %205 = vrcp.f32 %v119_v21  ;;  %v118_v23 = vmul.f32 0.3275911, %v116_v22  ;;  %v144_v27 = vsub.f32 0.0, %v116_v22  ;;  %v147_v30 = vmul.f32 1.442695, %v145_v26 }
  0xe0   :  { %v120_v24 = vadd.f32 1.0, %v118_v23  ;;  %v146_v31 = vmul.f32 %v144_v27, %v116_v22 }
  0xe2   :  { %207 = vrcp.f32 %v120_v24  ;;  %v149_v36 = vmul.f32 1.442695, %v146_v31 }
  0xe3   :  { %209 = vpow2.f32 %v147_v30 }
  0xe4   :  { %211 = vpow2.f32 %v149_v36 }
  0xeb   :  { %v206_v28 = vpop.eup %205 }
  0xec   :  { %v125_v29 = vmul.f32 1.0614054, %v206_v28 }
  0xee   :  { %v127_v32 = vadd.f32 -1.4531521, %v125_v29 }
  0xef   :  { %v208_v33 = vpop.eup %207 }
  0xf0   :  { %v129_v34 = vmul.f32 %v206_v28, %v127_v32  ;;  %v126_v35 = vmul.f32 1.0614054, %v208_v33  ;;  %v210_v49 = vpop.eup %209 }
  0xf1   :  { %v212_v54 = vpop.eup %211 }
  0xf2   :  { %v131_v37 = vadd.f32 1.4214138, %v129_v34  ;;  %v128_v38 = vadd.f32 -1.4531521, %v126_v35 }
  0xf4   :  { %v133_v39 = vmul.f32 %v206_v28, %v131_v37  ;;  %v130_v40 = vmul.f32 %v208_v33, %v128_v38 }
  0xf6   :  { %v135_v41 = vadd.f32 -0.28449672, %v133_v39  ;;  %v132_v42 = vadd.f32 1.4214138, %v130_v40 }
  0xf8   :  { %v137_v43 = vmul.f32 %v206_v28, %v135_v41  ;;  %v134_v44 = vmul.f32 %v208_v33, %v132_v42 }
  0xfa   :  { %v139_v45 = vadd.f32 0.2548296, %v137_v43  ;;  %v136_v46 = vadd.f32 -0.28449672, %v134_v44 }
  0xfc   :  { %v141_v47 = vmul.f32 %v206_v28, %v139_v45  ;;  %v138_v48 = vmul.f32 %v208_v33, %v136_v46 }
  0xfe   :  { %v151_v50 = vmul.f32 %v210_v49, %v141_v47  ;;  %v140_v51 = vadd.f32 0.2548296, %v138_v48 }
 0x100   :  { %v153_v52 = vsub.f32 1.0, %v151_v50  ;;  %v142_v53 = vmul.f32 %v208_v33, %v140_v51 }
 0x102   :  { %v157_v55 = vsub.f32 0.0, %v153_v52  ;;  %v152_v56 = vmul.f32 %v212_v54, %v142_v53 }
 0x104   :  { %v159_v57 = vsel %vm155_vm3, %v153_v52, %v157_v55  ;;  %v154_v58 = vsub.f32 1.0, %v152_v56 }
 0x105   :  { %v161_v60 = vadd.f32 1.0, %v159_v57 }
 0x106   :  { %v158_v61 = vsub.f32 0.0, %v154_v58 }
 0x107   :  { %v163_v62 = vmul.f32 %v161_v60, %v111_v59 }
 0x108   :  { %v160_v63 = vsel %vm156_vm4, %v154_v58, %v158_v61 }
 0x109   :  { %v187_v0 = vpack.c.bf16 %v163_v62, %v163_v62  ;;  %v162_v2 = vadd.f32 1.0, %v160_v63 }
 0x10b   :  { %174 = vst.msk [vmem:[%s260_s3] sm:$0xf] %vm173_vm5, %v187_v0  ;;  %v164_v3 = vmul.f32 %v162_v2, %v112_v1 }
 0x10d   :  { %v188_v4 = vpack.c.bf16 %v164_v3, %v164_v3 }
 0x10f   :  { %175 = vst.msk [vmem:[%s260_s3 + $0x4] sm:$0xf] %vm173_vm5, %v188_v4 }

// kernel: model_forward.17
= control target key start
LH: loop header
LB: loop body
LE: loop exit
PB: predicated region body
PF: predicated region fallthrough
CT: control target
= control target key end

     0   :  { %vm28_vm0 = vcmask 261120   ;;  %v220_v0 = vmov 0.0   ;;  %vm221_vm1 = vmmov 0   ;;  %vm178_vm2 = vcmask 257024   ;;  %s293_s1 = inlined_call_operand.vmem [shape: bf16[32,32], index: 1, kind: input, shape index: {}]   ;;  %s294_s0 = inlined_call_operand.vmem [shape: bf16[16,32], index: 0, kind: input, shape index: {}]   ;;  %s295_s3 = inlined_call_operand.vmem [shape: bf16[16,32], index: 3, kind: input, shape index: {}]   ;;  %s296_s2 = inlined_call_operand.vmem [shape: f32[1,32], index: 2, kind: input, shape index: {}]   ;;  %s297_s4 = inlined_call_operand.vmem [shape: f32[1,32], index: 4, kind: input, shape index: {}]   ;;  %s298_s5 = inlined_call_operand.vmem [shape: f32[1,32], index: 5, kind: input, shape index: {}]   ;;  %s299_s6 = inlined_call_operand.vmem [shape: bf16[16,32], index: 6, kind: output, shape index: {}]  }
   0x1   :  { %203 = vmatprep.subr.bf16.mxu0 %v220_v0  ;;  %v213_v1 = vld [vmem:[%s293_s1 + $0x8] sm:$0xff]   ;;  %207 = vmatprep.mubr.msk.bf16.mxu0 %vm221_vm1, %v220_v0  ;;  %29 = vst.msk [vmem:[#allocation2] sm:$0xff] %vm28_vm0, %v220_v0  ;;  %30 = vst.msk [vmem:[#allocation2 + $0x8] sm:$0xff] %vm28_vm0, %v220_v0  ;;  %v214_v2 = vld [vmem:[%s293_s1] sm:$0xff]  }
   0x2   :  { %204 = vmatpush3.bf16.msra.mxu0 %v213_v1  ;;  %v215_v3 = vld [vmem:[%s294_s0] sm:$0xff]  }
   0x3   :  { %205 = vmatprep.subr.bf16.mxu0 %v220_v0  ;;  %v197_v12 = vld [vmem:[%s295_s3] sm:$0xff]  }
   0x4   :  { %v189_v13 = vld [vmem:[%s296_s2] ss:$0 sm:$0xff]  ;;  %v198_v14 = vunpack.c.l.bf16 %v197_v12  ;;  %v199_v18 = vunpack.c.h.bf16 %v197_v12 }
   0x5   :  { %v190_v41 = vld [vmem:[%s297_s4] ss:$0 sm:$0xff] }
   0x6   :  { %206 = vmatpush3.bf16.msra.mxu0 %v214_v2  ;;  %v191_v43 = vld [vmem:[%s298_s5] ss:$0 sm:$0xff] }
   0x8   :  { %v31_v4 = vld [vmem:[#allocation2] sm:$0xff]  ;;  %v32_v8 = vld [vmem:[#allocation2 + $0x8] sm:$0xff] }
   0x9   :  { %208 = vmatmul.mubr.msk.bf16.vlgmr.msra.gmra.mxu0 %vm28_vm0, %v215_v3 }
  0xc9   :  { %v94_v5 = vpop.f32.mrf.mxu0 }
  0xca   :  { %v101_v6 = vadd.f32 %v94_v5, %v31_v4 }
  0xcb   :  { %v209_v7 = vpop.f32.mrf.mxu0 }
  0xcc   :  { %103 = vst.msk [vmem:[#allocation2] sm:$0xff] %vm28_vm0, %v101_v6 }
  0xcd   :  { %v97_v9 = vpop.f32.mrf.mxu0 }
  0xce   :  { %v102_v10 = vadd.f32 %v97_v9, %v32_v8 }
  0xcf   :  { %v210_v11 = vpop.f32.mrf.mxu0 }
  0xd0   :  { %104 = vst.msk [vmem:[#allocation2 + $0x8] sm:$0xff] %vm28_vm0, %v102_v10 }
  0xd3   :  { %v108_v15 = vld [vmem:[#allocation2] sm:$0xff] }
  0xd4   :  { %v117_v16 = vadd.f32 %v189_v13, %v108_v15 }
  0xd6   :  { %v123_v17 = vadd.f32 %v198_v14, %v117_v16 }
  0xd7   :  { %v109_v19 = vld [vmem:[#allocation2 + $0x8] sm:$0xff] }
  0xd8   :  { %v125_v20 = vsel %vm28_vm0, %v123_v17, 0.0  ;;  %v118_v21 = vadd.f32 %v189_v13, %v109_v19 }
  0xd9   :  { %126 = vadd.xlane.f32.xlu0 %v125_v20 }
  0xda   :  { %v124_v22 = vadd.f32 %v199_v18, %v118_v21 }
  0xdc   :  { %v128_v23 = vsel %vm28_vm0, %v124_v22, 0.0 }
  0xdd   :  { %129 = vadd.xlane.f32.xlu0 %v128_v23 }
 0x162   :  { %v127_v24 = vpop.xlane.xlu0 %126 }
 0x163   :  { %v132_v25 = vmul.f32 0.03125, %v127_v24 }
 0x165   :  { %v134_v26 = vsub.f32 %v123_v17, %v132_v25 }
 0x166   :  { %v130_v27 = vpop.xlane.xlu0 %129 }
 0x167   :  { %v133_v28 = vmul.f32 0.03125, %v130_v27  ;;  %v136_v29 = vmul.f32 %v134_v26, %v134_v26 }
 0x169   :  { %v135_v30 = vsub.f32 %v124_v22, %v133_v28  ;;  %v138_v31 = vsel %vm28_vm0, %v136_v29, 0.0 }
 0x16a   :  { %139 = vadd.xlane.f32.xlu1 %v138_v31 }
 0x16b   :  { %v137_v32 = vmul.f32 %v135_v30, %v135_v30 }
 0x16d   :  { %v141_v33 = vsel %vm28_vm0, %v137_v32, 0.0 }
 0x16e   :  { %142 = vadd.xlane.f32.xlu1 %v141_v33 }
 0x1f3   :  { %v140_v34 = vpop.xlane.xlu1 %139 }
 0x1f4   :  { %v144_v35 = vmul.f32 0.03125, %v140_v34 }
 0x1f6   :  { %v146_v36 = vadd.f32 1e-12, %v144_v35 }
 0x1f7   :  { %v143_v37 = vpop.xlane.xlu1 %142 }
 0x1f8   :  { %216 = vrsqrt.f32 %v146_v36  ;;  %v145_v38 = vmul.f32 0.03125, %v143_v37 }
 0x1fa   :  { %v147_v39 = vadd.f32 1e-12, %v145_v38 }
 0x1fc   :  { %218 = vrsqrt.f32 %v147_v39 }
 0x205   :  { %v217_v40 = vpop.eup %216 }
 0x206   :  { %v150_v42 = vmul.f32 %v217_v40, %v134_v26 }
 0x208   :  { %v159_v44 = vmul.f32 %v190_v41, %v150_v42 }
 0x209   :  { %v219_v45 = vpop.eup %218 }
 0x20a   :  { %v168_v46 = vadd.f32 %v191_v43, %v159_v44  ;;  %v151_v47 = vmul.f32 %v219_v45, %v135_v30 }
 0x20c   :  { %v194_v48 = vpack.c.bf16 %v168_v46, %v168_v46  ;;  %v160_v49 = vmul.f32 %v190_v41, %v151_v47 }
 0x20e   :  { %179 = vst.msk [vmem:[%s299_s6] sm:$0xf] %vm178_vm2, %v194_v48  ;;  %v169_v50 = vadd.f32 %v191_v43, %v160_v49 }
 0x210   :  { %v195_v51 = vpack.c.bf16 %v169_v50, %v169_v50 }
 0x212   :  { %180 = vst.msk [vmem:[%s299_s6 + $0x4] sm:$0xf] %vm178_vm2, %v195_v51 }

// kernel: model_forward.19
= control target key start
LH: loop header
LB: loop body
LE: loop exit
PB: predicated region body
PF: predicated region fallthrough
CT: control target
= control target key end

     0   :  { %vm28_vm0 = vcmask 261120   ;;  %v247_v0 = vmov 0.0   ;;  %vm248_vm1 = vmmov 0   ;;  %vm72_vm2 = vcmask 523264   ;;  %s325_s1 = inlined_call_operand.vmem [shape: bf16[64,32], index: 1, kind: input, shape index: {}]   ;;  %s326_s0 = inlined_call_operand.vmem [shape: bf16[16,64], index: 0, kind: input, shape index: {}]   ;;  %s327_s3 = inlined_call_operand.vmem [shape: bf16[16,32], index: 3, kind: input, shape index: {}]   ;;  %s328_s2 = inlined_call_operand.vmem [shape: f32[1,32], index: 2, kind: input, shape index: {}]   ;;  %s329_s4 = inlined_call_operand.vmem [shape: f32[1,32], index: 4, kind: input, shape index: {}]   ;;  %s330_s5 = inlined_call_operand.vmem [shape: f32[1,32], index: 5, kind: input, shape index: {}]   ;;  %s331_s6 = inlined_call_operand.vmem [shape: bf16[16,32], index: 6, kind: output, shape index: {}]  }
   0x1   :  { %224 = vmatprep.subr.bf16.mxu0 %v247_v0  ;;  %v238_v1 = vld [vmem:[%s325_s1 + $0x18] sm:$0xff]   ;;  %232 = vmatprep.mubr.msk.bf16.mxu0 %vm248_vm1, %v247_v0  ;;  %29 = vst.msk [vmem:[#allocation2] sm:$0xff] %vm28_vm0, %v247_v0  ;;  %30 = vst.msk [vmem:[#allocation2 + $0x8] sm:$0xff] %vm28_vm0, %v247_v0  ;;  %v239_v2 = vld [vmem:[%s325_s1 + $0x10] sm:$0xff]   ;;  %vm195_vm3 = vcmask 257024  }
   0x2   :  { %225 = vmatpush3.bf16.msra.mxu0 %v238_v1  ;;  %v240_v3 = vld [vmem:[%s325_s1 + $0x8] sm:$0xff]   ;;  %v241_v4 = vld [vmem:[%s325_s1] sm:$0xff]  }
   0x3   :  { %226 = vmatprep.subr.bf16.mxu0 %v247_v0  ;;  %v242_v5 = vld [vmem:[%s326_s0] sm:$0xff]  }
   0x4   :  { %v216_v14 = vld [vmem:[%s327_s3] sm:$0xff]  }
   0x5   :  { %v208_v15 = vld [vmem:[%s328_s2] ss:$0 sm:$0xff]  ;;  %v217_v16 = vunpack.c.l.bf16 %v216_v14  ;;  %v218_v20 = vunpack.c.h.bf16 %v216_v14 }
   0x6   :  { %227 = vmatpush3.bf16.msra.mxu0 %v239_v2  ;;  %v209_v43 = vld [vmem:[%s329_s4] ss:$0 sm:$0xff] }
   0x7   :  { %228 = vmatprep.subr.bf16.mxu0 %v247_v0  ;;  %v210_v45 = vld [vmem:[%s330_s5] ss:$0 sm:$0xff] }
   0x8   :  { %v31_v6 = vld [vmem:[#allocation2] sm:$0xff]  ;;  %v32_v10 = vld [vmem:[#allocation2 + $0x8] sm:$0xff] }
   0xa   :  { %229 = vmatpush3.bf16.msra.mxu0 %v240_v3 }
   0xb   :  { %230 = vmatprep.subr.bf16.mxu0 %v247_v0 }
   0xe   :  { %231 = vmatpush3.bf16.msra.mxu0 %v241_v4 }
  0x11   :  { %233 = vmatmul.mubr.msk.bf16.vlgmr.msra.gmra.mxu0 %vm72_vm2, %v242_v5 }
  0xd1   :  { %v110_v7 = vpop.f32.mrf.mxu0 }
  0xd2   :  { %v117_v8 = vadd.f32 %v110_v7, %v31_v6 }
  0xd3   :  { %v234_v9 = vpop.f32.mrf.mxu0 }
  0xd4   :  { %120 = vst.msk [vmem:[#allocation2] sm:$0xff] %vm28_vm0, %v117_v8 }
  0xd5   :  { %v113_v11 = vpop.f32.mrf.mxu0 }
  0xd6   :  { %v118_v12 = vadd.f32 %v113_v11, %v32_v10 }
  0xd7   :  { %v235_v13 = vpop.f32.mrf.mxu0 }
  0xd8   :  { %121 = vst.msk [vmem:[#allocation2 + $0x8] sm:$0xff] %vm28_vm0, %v118_v12 }
  0xdb   :  { %v125_v17 = vld [vmem:[#allocation2] sm:$0xff] }
  0xdc   :  { %v134_v18 = vadd.f32 %v208_v15, %v125_v17 }
  0xde   :  { %v140_v19 = vadd.f32 %v217_v16, %v134_v18 }
  0xdf   :  { %v126_v21 = vld [vmem:[#allocation2 + $0x8] sm:$0xff] }
  0xe0   :  { %v142_v22 = vsel %vm28_vm0, %v140_v19, 0.0  ;;  %v135_v23 = vadd.f32 %v208_v15, %v126_v21 }
  0xe1   :  { %143 = vadd.xlane.f32.xlu0 %v142_v22 }
  0xe2   :  { %v141_v24 = vadd.f32 %v218_v20, %v135_v23 }
  0xe4   :  { %v145_v25 = vsel %vm28_vm0, %v141_v24, 0.0 }
  0xe5   :  { %146 = vadd.xlane.f32.xlu0 %v145_v25 }
 0x16a   :  { %v144_v26 = vpop.xlane.xlu0 %143 }
 0x16b   :  { %v149_v27 = vmul.f32 0.03125, %v144_v26 }
 0x16d   :  { %v151_v28 = vsub.f32 %v140_v19, %v149_v27 }
 0x16e   :  { %v147_v29 = vpop.xlane.xlu0 %146 }
 0x16f   :  { %v150_v30 = vmul.f32 0.03125, %v147_v29  ;;  %v153_v31 = vmul.f32 %v151_v28, %v151_v28 }
 0x171   :  { %v152_v32 = vsub.f32 %v141_v24, %v150_v30  ;;  %v155_v33 = vsel %vm28_vm0, %v153_v31, 0.0 }
 0x172   :  { %156 = vadd.xlane.f32.xlu1 %v155_v33 }
 0x173   :  { %v154_v34 = vmul.f32 %v152_v32, %v152_v32 }
 0x175   :  { %v158_v35 = vsel %vm28_vm0, %v154_v34, 0.0 }
 0x176   :  { %159 = vadd.xlane.f32.xlu1 %v158_v35 }
 0x1fb   :  { %v157_v36 = vpop.xlane.xlu1 %156 }
 0x1fc   :  { %v161_v37 = vmul.f32 0.03125, %v157_v36 }
 0x1fe   :  { %v163_v38 = vadd.f32 1e-12, %v161_v37 }
 0x1ff   :  { %v160_v39 = vpop.xlane.xlu1 %159 }
 0x200   :  { %243 = vrsqrt.f32 %v163_v38  ;;  %v162_v40 = vmul.f32 0.03125, %v160_v39 }
 0x202   :  { %v164_v41 = vadd.f32 1e-12, %v162_v40 }
 0x204   :  { %245 = vrsqrt.f32 %v164_v41 }
 0x20d   :  { %v244_v42 = vpop.eup %243 }
 0x20e   :  { %v167_v44 = vmul.f32 %v244_v42, %v151_v28 }
 0x210   :  { %v176_v46 = vmul.f32 %v209_v43, %v167_v44 }
 0x211   :  { %v246_v47 = vpop.eup %245 }
 0x212   :  { %v185_v48 = vadd.f32 %v210_v45, %v176_v46  ;;  %v168_v49 = vmul.f32 %v246_v47, %v152_v32 }
 0x214   :  { %v213_v50 = vpack.c.bf16 %v185_v48, %v185_v48  ;;  %v177_v51 = vmul.f32 %v209_v43, %v168_v49 }
 0x216   :  { %196 = vst.msk [vmem:[%s331_s6] sm:$0xf] %vm195_vm3, %v213_v50  ;;  %v186_v52 = vadd.f32 %v210_v45, %v177_v51 }
 0x218   :  { %v214_v53 = vpack.c.bf16 %v186_v52, %v186_v52 }
 0x21a   :  { %197 = vst.msk [vmem:[%s331_s6 + $0x4] sm:$0xf] %vm195_vm3, %v214_v53 }

// kernel: model_forward.25
= control target key start
LH: loop header
LB: loop body
LE: loop exit
PB: predicated region body
PF: predicated region fallthrough
CT: control target
= control target key end

     0   :  { %vm19_vm0 = vcmask 261120   ;;  %v212_v0 = vmov 0.0   ;;  %vm213_vm1 = vmmov 0   ;;  %vm172_vm4 = vcmask 257024   ;;  %s257_s1 = inlined_call_operand.vmem [shape: bf16[32,32], index: 1, kind: input, shape index: {}]   ;;  %s258_s0 = inlined_call_operand.vmem [shape: bf16[16,32], index: 0, kind: input, shape index: {}]   ;;  %s259_s2 = inlined_call_operand.vmem [shape: f32[1,32], index: 2, kind: input, shape index: {}]   ;;  %s260_s3 = inlined_call_operand.vmem [shape: bf16[16,32], index: 3, kind: output, shape index: {}]  }
   0x1   :  { %191 = vmatprep.subr.bf16.mxu0 %v212_v0  ;;  %v201_v1 = vld [vmem:[%s257_s1 + $0x8] sm:$0xff]   ;;  %195 = vmatprep.mubr.msk.bf16.mxu0 %vm213_vm1, %v212_v0  ;;  %20 = vst.msk [vmem:[#allocation2] sm:$0xff] %vm19_vm0, %v212_v0  ;;  %21 = vst.msk [vmem:[#allocation2 + $0x8] sm:$0xff] %vm19_vm0, %v212_v0  ;;  %v202_v2 = vld [vmem:[%s257_s1] sm:$0xff]  }
   0x2   :  { %192 = vmatpush3.bf16.msra.mxu0 %v201_v1  ;;  %v203_v3 = vld [vmem:[%s258_s0] sm:$0xff]  }
   0x3   :  { %193 = vmatprep.subr.bf16.mxu0 %v212_v0  ;;  %v183_v12 = vld [vmem:[%s259_s2] ss:$0 sm:$0xff] }
   0x6   :  { %194 = vmatpush3.bf16.msra.mxu0 %v202_v2 }
   0x8   :  { %v22_v4 = vld [vmem:[#allocation2] sm:$0xff]  ;;  %v23_v8 = vld [vmem:[#allocation2 + $0x8] sm:$0xff] }
   0x9   :  { %196 = vmatmul.mubr.msk.bf16.vlgmr.msra.gmra.mxu0 %vm19_vm0, %v203_v3 }
  0xc9   :  { %v85_v5 = vpop.f32.mrf.mxu0 }
  0xca   :  { %v92_v6 = vadd.f32 %v85_v5, %v22_v4 }
  0xcb   :  { %v197_v7 = vpop.f32.mrf.mxu0 }
  0xcc   :  { %94 = vst.msk [vmem:[#allocation2] sm:$0xff] %vm19_vm0, %v92_v6 }
  0xcd   :  { %v88_v9 = vpop.f32.mrf.mxu0 }
  0xce   :  { %v93_v10 = vadd.f32 %v88_v9, %v23_v8 }
  0xcf   :  { %v198_v11 = vpop.f32.mrf.mxu0 }
  0xd0   :  { %95 = vst.msk [vmem:[#allocation2 + $0x8] sm:$0xff] %vm19_vm0, %v93_v10 }
  0xd3   :  { %v99_v13 = vld [vmem:[#allocation2] sm:$0xff] }
  0xd4   :  { %v108_v14 = vadd.f32 %v183_v12, %v99_v13 }
  0xd6   :  { %v112_v15 = vmul.f32 0.70710677, %v108_v14  ;;  %v110_v59 = vmul.f32 0.5, %v108_v14 }
  0xd7   :  { %v100_v16 = vld [vmem:[#allocation2 + $0x8] sm:$0xff] }
  0xd8   :  { %v114_v17 = vand.u32 2147483647, %v112_v15  ;;  %v109_v18 = vadd.f32 %v183_v12, %v100_v16  ;;  %vm154_vm2 = vcmp.ge.f32.partialorder %v112_v15, 0.0 }
  0xda   :  { %v116_v19 = vmul.f32 0.3275911, %v114_v17  ;;  %v113_v20 = vmul.f32 0.70710677, %v109_v18  ;;  %v142_v25 = vsub.f32 0.0, %v114_v17  ;;  %v111_v1 = vmul.f32 0.5, %v109_v18 }
  0xdc   :  { %v118_v21 = vadd.f32 1.0, %v116_v19  ;;  %v115_v22 = vand.u32 2147483647, %v113_v20  ;;  %v144_v26 = vmul.f32 %v142_v25, %v114_v17  ;;  %vm155_vm3 = vcmp.ge.f32.partialorder %v113_v20, 0.0 }
  0xde   :  { %204 = vrcp.f32 %v118_v21  ;;  %v117_v23 = vmul.f32 0.3275911, %v115_v22  ;;  %v143_v27 = vsub.f32 0.0, %v115_v22  ;;  %v146_v30 = vmul.f32 1.442695, %v144_v26 }
  0xe0   :  { %v119_v24 = vadd.f32 1.0, %v117_v23  ;;  %v145_v31 = vmul.f32 %v143_v27, %v115_v22 }
  0xe2   :  { %206 = vrcp.f32 %v119_v24  ;;  %v148_v36 = vmul.f32 1.442695, %v145_v31 }
  0xe3   :  { %208 = vpow2.f32 %v146_v30 }
  0xe4   :  { %210 = vpow2.f32 %v148_v36 }
  0xeb   :  { %v205_v28 = vpop.eup %204 }
  0xec   :  { %v124_v29 = vmul.f32 1.0614054, %v205_v28 }
  0xee   :  { %v126_v32 = vadd.f32 -1.4531521, %v124_v29 }
  0xef   :  { %v207_v33 = vpop.eup %206 }
  0xf0   :  { %v128_v34 = vmul.f32 %v205_v28, %v126_v32  ;;  %v125_v35 = vmul.f32 1.0614054, %v207_v33  ;;  %v209_v49 = vpop.eup %208 }
  0xf1   :  { %v211_v54 = vpop.eup %210 }
  0xf2   :  { %v130_v37 = vadd.f32 1.4214138, %v128_v34  ;;  %v127_v38 = vadd.f32 -1.4531521, %v125_v35 }
  0xf4   :  { %v132_v39 = vmul.f32 %v205_v28, %v130_v37  ;;  %v129_v40 = vmul.f32 %v207_v33, %v127_v38 }
  0xf6   :  { %v134_v41 = vadd.f32 -0.28449672, %v132_v39  ;;  %v131_v42 = vadd.f32 1.4214138, %v129_v40 }
  0xf8   :  { %v136_v43 = vmul.f32 %v205_v28, %v134_v41  ;;  %v133_v44 = vmul.f32 %v207_v33, %v131_v42 }
  0xfa   :  { %v138_v45 = vadd.f32 0.2548296, %v136_v43  ;;  %v135_v46 = vadd.f32 -0.28449672, %v133_v44 }
  0xfc   :  { %v140_v47 = vmul.f32 %v205_v28, %v138_v45  ;;  %v137_v48 = vmul.f32 %v207_v33, %v135_v46 }
  0xfe   :  { %v150_v50 = vmul.f32 %v209_v49, %v140_v47  ;;  %v139_v51 = vadd.f32 0.2548296, %v137_v48 }
 0x100   :  { %v152_v52 = vsub.f32 1.0, %v150_v50  ;;  %v141_v53 = vmul.f32 %v207_v33, %v139_v51 }
 0x102   :  { %v156_v55 = vsub.f32 0.0, %v152_v52  ;;  %v151_v56 = vmul.f32 %v211_v54, %v141_v53 }
 0x104   :  { %v158_v57 = vsel %vm154_vm2, %v152_v52, %v156_v55  ;;  %v153_v58 = vsub.f32 1.0, %v151_v56 }
 0x105   :  { %v160_v60 = vadd.f32 1.0, %v158_v57 }
 0x106   :  { %v157_v61 = vsub.f32 0.0, %v153_v58 }
 0x107   :  { %v162_v62 = vmul.f32 %v160_v60, %v110_v59 }
 0x108   :  { %v159_v63 = vsel %vm155_vm3, %v153_v58, %v157_v61 }
 0x109   :  { %v186_v0 = vpack.c.bf16 %v162_v62, %v162_v62  ;;  %v161_v2 = vadd.f32 1.0, %v159_v63 }
 0x10b   :  { %173 = vst.msk [vmem:[%s260_s3] sm:$0xf] %vm172_vm4, %v186_v0  ;;  %v163_v3 = vmul.f32 %v161_v2, %v111_v1 }
 0x10d   :  { %v187_v4 = vpack.c.bf16 %v163_v3, %v163_v3 }
 0x10f   :  { %174 = vst.msk [vmem:[%s260_s3 + $0x4] sm:$0xf] %vm172_vm4, %v187_v4 }

// kernel: model_forward.27
= control target key start
LH: loop header
LB: loop body
LE: loop exit
PB: predicated region body
PF: predicated region fallthrough
CT: control target
= control target key end

     0   :  { %v359_v1 = vmov 0.0   ;;  %vm360_vm0 = vmmov 0   ;;  %s485_s0 = inlined_call_operand.vmem [shape: bf16[16,32], index: 0, kind: input, shape index: {}]   ;;  %s486_s1 = inlined_call_operand.vmem [shape: bf16[2,32], index: 1, kind: input, shape index: {}]   ;;  %s487_s2 = inlined_call_operand.vmem [shape: bf16[32,128], index: 2, kind: input, shape index: {}]   ;;  %s488_s3 = inlined_call_operand.vmem [shape: f32[1,128], index: 3, kind: input, shape index: {}]   ;;  %s489_s4 = inlined_call_operand.vmem [shape: s32[16,1], index: 4, kind: input, shape index: {}]   ;;  %s490_s5 = inlined_call_operand.vmem [shape: f32[16,1], index: 5, kind: output, shape index: {0}]   ;;  %s491_s6 = inlined_call_operand.vmem [shape: f32[16,1], index: 6, kind: output, shape index: {1}]   ;;  %s492_s7 = inlined_call_operand.hbm [shape: f32[2,128], index: 7, kind: output, shape index: {2}]  }
   0x1   :  { %v322_v0 = vld [vmem:[%s487_s2 + $0x8] sm:$0xff]   ;;  %299 = vmatprep.subr.bf16.mxu0 %v359_v1  ;;  %307 = vmatprep.subr.bf16.mxu1 %v359_v1  ;;  %v323_v2 = vld [vmem:[%s487_s2] sm:$0xff]  }
   0x2   :  { %300 = vmatpush3.bf16.msra.mxu0 %v322_v0  ;;  %303 = vmatprep.mubr.msk.bf16.mxu0 %vm360_vm0, %v359_v1 }
   0x3   :  { %301 = vmatprep.subr.bf16.mxu0 %v359_v1  ;;  %308 = vmatpush3.bf16.msra.mxu1 %v322_v0 }
   0x4   :  { %13 = vsyncpa [#allocation6], 0  ;;  %309 = vmatprep.subr.bf16.mxu1 %v359_v1  ;;  %311 = vmatprep.mubr.msk.bf16.mxu1 %vm360_vm0, %v359_v1  ;;  %v324_v3 = vld [vmem:[%s485_s0] sm:$0xff]   ;;  %vm66_vm1 = vcmask 261120   ;;  %v361_v4 = vmov 0   ;;  %vm29_vm3 = vcmask 7168   ;;  %v113_v25 = vlaneseq }
   0x5   :  { %321 = vset.pattern.permute.xlu0 %v361_v4  ;;  %320 = vset.pattern.permute.xlu1 %v361_v4  ;;  %v111_v5 = vld [vmem:[%s489_s4] sm:$0xff]  ;;  %32 = vst.msk [vmem:[#allocation3] sm:$0xff] %vm29_vm3, %v359_v1  ;;  %33 = vst.msk [vmem:[#allocation3 + $0x8] sm:$0xff] %vm29_vm3, %v359_v1  ;;  %v362_v13 = vmov -inf   ;;  %v112_v15 = vld [vmem:[%s489_s4 + $0x8] sm:$0xff] }
   0x6   :  { %302 = vmatpush3.bf16.msra.mxu0 %v323_v2  ;;  %vm235_vm2 = vcmp.ne.s32.totalorder %v111_v5, 4294967196  ;;  %34 = vst.msk [vmem:[#allocation4] sm:$0xff] %vm29_vm3, %v359_v1  ;;  %35 = vst.msk [vmem:[#allocation4 + $0x8] sm:$0xff] %vm29_vm3, %v359_v1  ;;  %v442_v7 = vld [vmem:[%s488_s3] ss:$0 sm:$0xff]  ;;  %vm236_vm4 = vcmp.ne.s32.totalorder %v112_v15, 4294967196 }
   0x7   :  { %310 = vmatpush3.bf16.msra.mxu1 %v323_v2  ;;  %v424_v6 = vsel %vm235_vm2, 1.0, %v359_v1  ;;  %30 = vst.msk [vmem:[#allocation2] sm:$0xff] %vm29_vm3, %v362_v13  ;;  %31 = vst.msk [vmem:[#allocation2 + $0x8] sm:$0xff] %vm29_vm3, %v362_v13  ;;  %v452_v16 = vsel %vm236_vm4, 1.0, %v359_v1  ;;  %v187_v17 = vld [vmem:[%s486_s1] sm:$0x1] }
   0x8   :  { %259 = vst.msk [vmem:[%s491_s6] sm:$0xff] %vm29_vm3, %v424_v6  ;;  %260 = vst.msk [vmem:[%s491_s6 + $0x8] sm:$0xff] %vm29_vm3, %v452_v16  ;;  %v114_v27 = vand.u32 127, %v113_v25  ;;  %s363_s1 = smov [#allocation5]  }
   0x9   :  { %304 = vmatmul.mubr.msk.bf16.vlgmr.msra.gmra.mxu0 %vm66_vm1, %v324_v3  ;;  %s271_s4 = sshll.u32 %s363_s1, 4  ;;  %s272_s4 = int_to_ptr.vmem [resolvable:$true] %s271_s4 }
   0xa   :  { %312 = vmatmul.mubr.msk.bf16.vlgmr.msra.gmra.mxu1 %vm66_vm1, %v187_v17  ;;  %s337_s6 = scalar_lea.vmem %s272_s4, 32  ;;  %p342_p1 = scmp.lt.s32.totalorder %s272_s4, %s272_s4 }
   0xb   :  { %p338_p0 = scmp.ne.s32.totalorder %s272_s4, %s337_s6  ;;  %p343_p2 = scmp.lt.s32.totalorder %s337_s6, %s337_s6 }
   0xd   :  { %v130_v42 = vld [vmem:[#allocation4] sm:$0xff]  ;;  %p344_p3 = por %p343_p2, %p342_p1 }
   0xe   :  { %v143_v18 = vld [vmem:[#allocation2] sm:$0xff]  ;;  %v144_v21 = vld [vmem:[#allocation2 + $0x8] sm:$0xff] }
   0xf   :  { %p345_p4 = pnand %p344_p3, %p338_p0 }
  0xc9   :  { %v104_v8 = vpop.f32.mrf.mxu0 }
  0xca   :  { %v105_v9 = vadd.f32 %v442_v7, %v104_v8  ;;  %v225_v45 = vpop.f32.mrf.mxu1 }
  0xcb   :  { %v305_v10 = vpop.f32.mrf.mxu0  ;;  %v226_v49 = vadd.f32 %v442_v7, %v225_v45 }
  0xcc   :  { %145 = vmax.xlane.f32.xlu0 %v105_v9  ;;  %v313_v46 = vpop.f32.mrf.mxu1 }
  0xcd   :  { %v107_v11 = vpop.f32.mrf.mxu0  ;;  %231 = vst [vmem:[#allocation5] sm:$0x3] %v226_v49 }
  0xce   :  { %v108_v12 = vadd.f32 %v442_v7, %v107_v11  ;;  %v228_v47 = vpop.f32.mrf.mxu1 }
  0xcf   :  { %v306_v14 = vpop.f32.mrf.mxu0 }
  0xd0   :  { %147 = vmax.xlane.f32.xlu0 %v108_v12  ;;  %v314_v48 = vpop.f32.mrf.mxu1 }
  0xe6   :  { %119 = vperm.xlu0 %321, %v111_v5  }
 0x155   :  { %v146_v19 = vpop.xlane.xlu0 %145 }
 0x156   :  { %v149_v20 = vmax.f32 %v143_v18, %v146_v19 }
 0x158   :  { %v153_v22 = vsub.f32 %v143_v18, %v149_v20  ;;  %185 = vst.msk [vmem:[#allocation2] sm:$0xff] %vm29_vm3, %v149_v20  ;;  %163 = vperm.xlu1 %320, %v149_v20  }
 0x159   :  { %v148_v23 = vpop.xlane.xlu0 %147 }
 0x15a   :  { %v150_v24 = vmax.f32 %v144_v21, %v148_v23 }
 0x15c   :  { %v154_v26 = vsub.f32 %v144_v21, %v150_v24  ;;  %186 = vst.msk [vmem:[#allocation2 + $0x8] sm:$0xff] %vm29_vm3, %v150_v24  ;;  %168 = vperm.xlu1 %320, %v150_v24  }
 0x160   :  { %122 = vperm.xlu1 %320, %v112_v15  }
 0x161   :  { %v120_v28 = vpop.permute.xlu0 %119 }
 0x162   :  { %vm124_vm5 = vcmp.eq.s32.totalorder %v114_v27, %v120_v28 }
 0x163   :  { %v288_v29 = vsel %vm124_vm5, 1.0, %v359_v1 }
 0x164   :  { %v132_v30 = vmul.f32 %v288_v29, %v105_v9 }
 0x166   :  { %134 = vadd.xlane.f32.xlu0 %v132_v30 }
 0x1d3   :  { %v164_v31 = vpop.permute.xlu1 %163 }
 0x1d4   :  { %v171_v32 = vsub.f32 %v105_v9, %v164_v31 }
 0x1d6   :  { %v173_v33 = vmul.f32 1.442695, %v171_v32 }
 0x1d7   :  { %v169_v34 = vpop.permute.xlu1 %168 }
 0x1d8   :  { %325 = vpow2.f32 %v173_v33  ;;  %v172_v35 = vsub.f32 %v108_v12, %v169_v34 }
 0x1da   :  { %v175_v36 = vmul.f32 1.442695, %v172_v35 }
 0x1db   :  { %v123_v37 = vpop.permute.xlu1 %122 }
 0x1dc   :  { %327 = vpow2.f32 %v175_v36  ;;  %vm125_vm6 = vcmp.eq.s32.totalorder %v114_v27, %v123_v37 }
 0x1dd   :  { %v289_v40 = vsel %vm125_vm6, 1.0, %v359_v1 }
 0x1de   :  { %v133_v41 = vmul.f32 %v289_v40, %v108_v12 }
 0x1e5   :  { %v326_v38 = vpop.eup %325 }
 0x1e6   :  { %177 = vadd.xlane.f32.xlu1 %v326_v38 }
 0x1e9   :  { %v328_v39 = vpop.eup %327 }
 0x1ea   :  { %179 = vadd.xlane.f32.xlu1 %v328_v39 }
 0x1ee   :  { %136 = vadd.xlane.f32.xlu1 %v133_v41 }
 0x1ef   :  { %v135_v43 = vpop.xlane.xlu0 %134 }
 0x1f0   :  { %v138_v44 = vadd.f32 %v135_v43, %v130_v42 }
 0x1f2   :  { %141 = vst.msk [vmem:[#allocation4] sm:$0xff] %vm29_vm3, %v138_v44 }
 0x1f3   :  { %348 = shalt.err (!%p345_p4)
}
 0x1f4   :  { %274 = dma.vmem_to_hbm [thread:$0]  %s272_s4, 32, %s492_s7, [#allocation6]   ;;  %v155_v50 = vmul.f32 1.442695, %v153_v22  ;;  %v157_v51 = vmul.f32 1.442695, %v154_v26 }
 0x1f5   :  { %v151_v53 = vld [vmem:[#allocation3] sm:$0xff]  ;;  %v152_v57 = vld [vmem:[#allocation3 + $0x8] sm:$0xff]  ;;  %v131_v62 = vld [vmem:[#allocation4 + $0x8] sm:$0xff] }
 0x1f6   :  { %329 = vpow2.f32 %v155_v50  ;;  %v241_v5 = vld [vmem:[#allocation2] sm:$0xff]  ;;  %v242_v12 = vld [vmem:[#allocation2 + $0x8] sm:$0xff] }
 0x1f7   :  { %331 = vpow2.f32 %v157_v51 }
 0x1f9   :  { %v251_v9 = vld [vmem:[#allocation4] sm:$0xff] }
 0x203   :  { %v330_v52 = vpop.eup %329 }
 0x204   :  { %v159_v54 = vmul.f32 %v330_v52, %v151_v53  ;;  %v332_v55 = vpop.eup %331 }
 0x205   :  { %v160_v59 = vmul.f32 %v332_v55, %v152_v57 }
 0x26f   :  { %v178_v56 = vpop.xlane.xlu1 %177 }
 0x270   :  { %v181_v58 = vadd.f32 %v178_v56, %v159_v54 }
 0x272   :  { %183 = vst.msk [vmem:[#allocation3] sm:$0xff] %vm29_vm3, %v181_v58 }
 0x273   :  { %v180_v60 = vpop.xlane.xlu1 %179 }
 0x274   :  { %v182_v61 = vadd.f32 %v180_v60, %v160_v59 }
 0x276   :  { %184 = vst.msk [vmem:[#allocation3 + $0x8] sm:$0xff] %vm29_vm3, %v182_v61 }
 0x277   :  { %v137_v63 = vpop.xlane.xlu1 %136 }
 0x278   :  { %v139_v0 = vadd.f32 %v137_v63, %v131_v62 }
 0x279   :  { %v243_v1 = vld [vmem:[#allocation3] sm:$0xff] }
 0x27a   :  { %333 = vlog2.f32 %v243_v1  ;;  %142 = vst.msk [vmem:[#allocation4 + $0x8] sm:$0xff] %vm29_vm3, %v139_v0 }
 0x27d   :  { %v244_v2 = vld [vmem:[#allocation3 + $0x8] sm:$0xff] }
 0x27e   :  { %335 = vlog2.f32 %v244_v2 }
 0x281   :  { %v252_v15 = vld [vmem:[#allocation4 + $0x8] sm:$0xff] }
 0x287   :  { %v334_v3 = vpop.eup %333 }
 0x288   :  { %v246_v4 = vmul.f32 0.6931472, %v334_v3 }
 0x28a   :  { %v249_v7 = vadd.f32 %v246_v4, %v241_v5 }
 0x28b   :  { %v336_v8 = vpop.eup %335 }
 0x28c   :  { %v253_v10 = vsub.f32 %v249_v7, %v251_v9  ;;  %v248_v11 = vmul.f32 0.6931472, %v336_v8 }
 0x28e   :  { %v255_v13 = vmul.f32 %v424_v6, %v253_v10  ;;  %v250_v14 = vadd.f32 %v248_v11, %v242_v12 }
 0x290   :  { %257 = vst.msk [vmem:[%s490_s5] sm:$0xff] %vm29_vm3, %v255_v13  ;;  %v254_v17 = vsub.f32 %v250_v14, %v252_v15 }
 0x292   :  { %v256_v18 = vmul.f32 %v452_v16, %v254_v17 }
 0x294   :  { %258 = vst.msk [vmem:[%s490_s5 + $0x8] sm:$0xff] %vm29_vm3, %v256_v18 }
 0x295   :  { %357 = dma.done.wait [#allocation6], 32  }
 0x296   :  { %358 = vsyncadd [#allocation6], 4294967264 }
 0x297   :  { %282 = vsyncpa [#allocation6], 1 }

</bundles_post_ra>
